<compile_context>
chip_gen: v5e
topology: v5e:2x2
jax: 0.10.0
libtpu: 0.0.40
codegen_flags: <defaults>
</compile_context>

<pallas_src>
import numpy as np
import jax
import jax.numpy as jnp
from jax import lax
from jax.experimental import pallas as pl
from jax.experimental.pallas import tpu as pltpu


N_CONV = 6
CONV_STRIDES = (1, 2, 2, 2, 2, 2)
CONV_CH = 8            # every encoder conv has 8 output channels
N_ENC = N_CONV - 1     # conv6 is folded into fc1 on the host


# --------------------------------------------------------------------------------------
# Kernel: whole CNN forward on one batch tile.
# refs = [x, A1, beta1, ..., A5, beta5, Wfe', bfe', W1, b1, W2, b2, w3col, b3, feat, pred]
# --------------------------------------------------------------------------------------
def cnn_fused_kernel(*refs):
    x_ref = refs[0]                                   # (TB, Cin*L) — batch on sublanes
    enc_refs = refs[1:1 + 2 * N_ENC]                  # folded conv operators + biases
    (wfe_ref, bfe_ref, w1_ref, b1_ref,
     w2_ref, b2_ref, w3_ref, b3_ref) = refs[1 + 2 * N_ENC: 9 + 2 * N_ENC]
    feat_ref, pred_ref = refs[9 + 2 * N_ENC], refs[10 + 2 * N_ENC]

    # Layer 1: contract the shared Cin*L axis directly (A1 @ x^T).  No wrapper-side or
    # explicit in-kernel transpose; the MXU consumes the transposed RHS.  Result is
    # (Cout*Lout, TB): batch lands on the LANE axis for the rest of the kernel.
    x = lax.dot_general(enc_refs[0][...], x_ref[...],
                        dimension_numbers=(((1,), (1,)), ((), ())),
                        preferred_element_type=jnp.float32) + enc_refs[1][...]
    x = jnp.maximum(x, 0.0)

    # Layers 2..5: each folded conv is one MXU matmul + bias + ReLU, lane-dense.
    for li in range(1, N_ENC):
        a_ref, beta_ref = enc_refs[2 * li], enc_refs[2 * li + 1]
        x = jnp.dot(a_ref[...], x, preferred_element_type=jnp.float32) + beta_ref[...]
        x = jnp.maximum(x, 0.0)
    # x is now (16, TB) = conv5 output (8 ch x len 2).  conv6 (no ReLU), the identity
    # dropout and fc1 are all folded into (wfe_ref, bfe_ref).

    # ---- cnn_fe.fc1 (with conv6 folded in): features, written lane-dense as (H, TB) ----
    feat_t = jnp.dot(wfe_ref[...], x, preferred_element_type=jnp.float32) + bfe_ref[...]
    feat_ref[...] = feat_t.astype(feat_ref.dtype)

    # ---- cnn_pred head (dropout = identity in eval) ----
    h = jnp.maximum(jnp.dot(w1_ref[...], feat_t,
                            preferred_element_type=jnp.float32) + b1_ref[...], 0.0)
    h = jnp.maximum(jnp.dot(w2_ref[...], h,
                            preferred_element_type=jnp.float32) + b2_ref[...], 0.0)
    # fc3: (1 x Hh) @ (Hh x TB) as a VPU multiply + sublane reduction (XLU); avoids a
    # nearly-empty M=1 MXU pass.  b3 is a scalar read from SMEM.
    pred_t = jnp.sum(w3_ref[...] * h, axis=0, keepdims=True) + b3_ref[0, 0]
    pred_ref[...] = pred_t.astype(pred_ref.dtype)


# --------------------------------------------------------------------------------------
# One-time, host-side (numpy) weight folding — no per-call XLA ops.
# --------------------------------------------------------------------------------------
def _conv_out_len(lin, stride, kernel=3, pad=1):
    return (lin + 2 * pad - kernel) // stride + 1


def _tap_selector(lin, lout, stride, tap, pad=1):
    """0/1 matrix T with T[p, j] = 1 iff input position p feeds output j at this tap."""
    t = np.zeros((lin, lout), np.float32)
    for j in range(lout):
        p = stride * j + tap - pad
        if 0 <= p < lin:
            t[p, j] = 1.0
    return t


def _fold_conv_layer(w, b, lin, stride):
    """Fold Conv1d weights (Cout, Cin, 3) into a dense (Cout*Lout, Cin*Lin) operator."""
    cout, cin, k = w.shape
    lout = _conv_out_len(lin, stride)
    a = np.zeros((cout * lout, cin * lin), np.float32)
    for kk in range(k):
        t = _tap_selector(lin, lout, stride, kk)                # (Lin, Lout)
        a += np.kron(w[:, :, kk].astype(np.float32), t.T)       # (Cout*Lout, Cin*Lin)
    beta = np.kron(b.astype(np.float32), np.ones((lout,), np.float32))[:, None]
    return a, beta, lout


def prepare_params(params, seq_len):
    """Fold all convs into dense operators and fuse conv6 into fc1.  Call ONCE."""
    conv_as, conv_betas = [], []
    lin = seq_len
    for i, s in enumerate(CONV_STRIDES):
        a, beta, lin = _fold_conv_layer(np.asarray(params["conv_w"][i]),
                                        np.asarray(params["conv_b"][i]), lin, s)
        conv_as.append(a)
        conv_betas.append(beta)
    assert lin == 1, "encoder must reduce the sequence length to 1 (use L=32)"

    # Fold conv6 into fc1: no ReLU between them and dropout is identity here.
    a6, beta6 = conv_as[-1], conv_betas[-1]                     # (8, 16), (8, 1)
    wfe = np.asarray(params["fce_w"], np.float32)               # (H, 8)
    bfe = np.asarray(params["fce_b"], np.float32)               # (H,)
    wfe_f = wfe @ a6                                            # (H, 16)
    bfe_f = wfe @ beta6[:, 0] + bfe                             # (H,)

    hh = np.asarray(params["w2"]).shape[0]
    enc_ops = []
    for a, beta in zip(conv_as[:-1], conv_betas[:-1]):
        enc_ops += [jnp.asarray(a), jnp.asarray(beta)]
    return {
        "enc_ops": enc_ops,                                     # A1,beta1,...,A5,beta5
        "wfe": jnp.asarray(wfe_f),
        "bfe": jnp.asarray(bfe_f[:, None]),
        "w1": jnp.asarray(params["w1"], dtype=jnp.float32),
        "b1": jnp.asarray(params["b1"], dtype=jnp.float32)[:, None],
        "w2": jnp.asarray(params["w2"], dtype=jnp.float32),
        "b2": jnp.asarray(params["b2"], dtype=jnp.float32)[:, None],
        "w3": jnp.asarray(params["w3"], dtype=jnp.float32).reshape(hh, 1),
        "b3": jnp.asarray(params["b3"], dtype=jnp.float32).reshape(1, 1),
    }


# --------------------------------------------------------------------------------------
# Wrapper
# --------------------------------------------------------------------------------------
def cnn_forward(src, prepared, *, batch_tile=None):
    """src: (B, in_dim, L) float32. Returns (predictions (B,1), features (B, H))."""
    B, c_in, L = src.shape
    H = prepared["wfe"].shape[0]

    # Free view: rows = batch (sublanes), cols = c*L + l (matches folded-operator order).
    x2d = src.reshape(B, c_in * L).astype(jnp.float32)

    # Batch tile: pad batch to a multiple of 128 lanes; pick the largest tile (<=512,
    # multiple of 128) that still yields >=2 grid steps when B > 128, so v7x's second
    # TensorCore gets work while per-step overhead stays amortized.
    if batch_tile is None:
        lanes = max(128, pl.cdiv(B, 128) * 128)
        if lanes <= 128:
            batch_tile = 128
        else:
            batch_tile = max(128, min(512, (lanes // 2) // 128 * 128))
    tb = batch_tile
    bp = pl.cdiv(B, tb) * tb
    if bp != B:
        x2d = jnp.pad(x2d, ((0, bp - B), (0, 0)))

    enc_ops = prepared["enc_ops"]
    wfe, bfe = prepared["wfe"], prepared["bfe"]
    w1, b1 = prepared["w1"], prepared["b1"]
    w2, b2 = prepared["w2"], prepared["b2"]
    w3, b3 = prepared["w3"], prepared["b3"]

    grid = (bp // tb,)
    resident = lambda shape: pl.BlockSpec(shape, lambda i: tuple(0 for _ in shape))

    in_specs = [pl.BlockSpec((tb, c_in * L), lambda i: (i, 0))]      # batched input
    for op in enc_ops:
        in_specs.append(resident(op.shape))                         # VMEM-resident weights
    in_specs += [
        resident(wfe.shape), resident(bfe.shape),
        resident(w1.shape), resident(b1.shape),
        resident(w2.shape), resident(b2.shape),
        resident(w3.shape),
        pl.BlockSpec(memory_space=pltpu.MemorySpace.SMEM),           # b3 scalar
    ]
    out_specs = (pl.BlockSpec((H, tb), lambda i: (0, i)),            # lane-dense outputs
                 pl.BlockSpec((1, tb), lambda i: (0, i)))
    out_shape = (jax.ShapeDtypeStruct((H, bp), jnp.float32),
                 jax.ShapeDtypeStruct((1, bp), jnp.float32))

    feat_t, pred_t = pl.pallas_call(
        cnn_fused_kernel,
        grid=grid,
        in_specs=in_specs,
        out_specs=out_specs,
        out_shape=out_shape,
        compiler_params=pltpu.CompilerParams(
            dimension_semantics=("parallel",),   # lets v7x shard the batch across 2 TCs
        ),
    )(x2d, *enc_ops, wfe, bfe, w1, b1, w2, b2, w3, b3)

    # Layout plumbing only; fuse under jit with the kernel epilogue.
    predictions = pred_t[:, :B].T    # (B, 1)
    features = feat_t[:, :B].T       # (B, H)
    return predictions, features


# --------------------------------------------------------------------------------------
# Plain-JAX reference (same eval-mode semantics) and synthetic params
# --------------------------------------------------------------------------------------
def reference_forward(src, params):
    x = src.astype(jnp.float32)
    for i, s in enumerate(CONV_STRIDES):
        w, b = params["conv_w"][i], params["conv_b"][i]
        lin = x.shape[-1]
        lout = _conv_out_len(lin, s)
        xp = jnp.pad(x, ((0, 0), (0, 0), (1, 1)))
        y = jnp.zeros((x.shape[0], w.shape[0], lout), jnp.float32)
        for k in range(3):
            xk = xp[:, :, k: k + s * (lout - 1) + 1: s]
            y = y + jnp.einsum("oc,bcl->bol", w[:, :, k], xk)
        y = y + b[None, :, None]
        x = jnp.maximum(y, 0.0) if i < N_CONV - 1 else y
    flat = x.reshape(x.shape[0], -1)                       # (B, 8)
    feat = flat @ params["fce_w"].T + params["fce_b"]
    h = jnp.maximum(feat @ params["w1"].T + params["b1"], 0.0)
    h = jnp.maximum(h @ params["w2"].T + params["b2"], 0.0)
    pred = h @ params["w3"].T + params["b3"]
    return pred, feat


def init_params(key, in_dim, hidden_size):
    Hh = hidden_size // 2
    keys = jax.random.split(key, 20)
    ki = 0
    conv_w, conv_b = [], []
    cin = in_dim
    for _ in range(N_CONV):
        conv_w.append(0.25 * jax.random.normal(keys[ki], (CONV_CH, cin, 3), jnp.float32)); ki += 1
        conv_b.append(0.10 * jax.random.normal(keys[ki], (CONV_CH,), jnp.float32)); ki += 1
        cin = CONV_CH
    p = {"conv_w": conv_w, "conv_b": conv_b}
    p["fce_w"] = 0.30 * jax.random.normal(keys[ki], (hidden_size, CONV_CH), jnp.float32); ki += 1
    p["fce_b"] = 0.10 * jax.random.normal(keys[ki], (hidden_size,), jnp.float32); ki += 1
    p["w1"] = 0.20 * jax.random.normal(keys[ki], (hidden_size, hidden_size), jnp.float32); ki += 1
    p["b1"] = 0.10 * jax.random.normal(keys[ki], (hidden_size,), jnp.float32); ki += 1
    p["w2"] = 0.20 * jax.random.normal(keys[ki], (Hh, hidden_size), jnp.float32); ki += 1
    p["b2"] = 0.10 * jax.random.normal(keys[ki], (Hh,), jnp.float32); ki += 1
    p["w3"] = 0.20 * jax.random.normal(keys[ki], (1, Hh), jnp.float32); ki += 1
    p["b3"] = 0.10 * jax.random.normal(keys[ki], (1,), jnp.float32); ki += 1
    return p


if __name__ == "__main__":
    B, C_IN, L, H = 4, 4, 32, 32                 # small demo: batch=4, channels=4, seq=32
    key = jax.random.PRNGKey(0)
    k_src, k_par, k_big = jax.random.split(key, 3)

    src = jax.random.normal(k_src, (B, C_IN, L), jnp.float32)
    params = init_params(k_par, C_IN, H)

    # One-time host-side folding (outside the per-call path).
    prepared = prepare_params(params, seq_len=L)

    fwd = jax.jit(cnn_forward, static_argnames=("batch_tile",))

    pred, feat = fwd(src, prepared)
    pred, feat = jax.block_until_ready((pred, feat))
    ref_pred, ref_feat = reference_forward(src, params)
    assert pred.shape == (B, 1) and feat.shape == (B, H), (pred.shape, feat.shape)
    assert jnp.allclose(pred, ref_pred, atol=2e-4, rtol=2e-3), "prediction mismatch"
    assert jnp.allclose(feat, ref_feat, atol=2e-4, rtol=2e-3), "feature mismatch"

    # Larger, non-multiple-of-128 batch: exercises lane padding, the multi-step batch
    # grid (>=2 steps so v7x can shard across both TensorCores), and VMEM-resident weights.
    B_BIG = 300
    src_b = jax.random.normal(k_big, (B_BIG, C_IN, L), jnp.float32)
    pred_b, feat_b = fwd(src_b, prepared)
    pred_b, feat_b = jax.block_until_ready((pred_b, feat_b))
    ref_pred_b, ref_feat_b = reference_forward(src_b, params)
    assert jnp.allclose(pred_b, ref_pred_b, atol=2e-4, rtol=2e-3), "batched prediction mismatch"
    assert jnp.allclose(feat_b, ref_feat_b, atol=2e-4, rtol=2e-3), "batched feature mismatch"

    print("KERNEL_OK")
</pallas_src>

<mosaic_0001>
module attributes {stable_mosaic.version = 11 : i64} {
  func.func @cnn_fused_kernel(%arg0: i32, %arg1: memref<128x128xf32, #tpu.memory_space<vmem>>, %arg2: memref<256x128xf32, #tpu.memory_space<vmem>>, %arg3: memref<256x1xf32, #tpu.memory_space<vmem>>, %arg4: memref<128x256xf32, #tpu.memory_space<vmem>>, %arg5: memref<128x1xf32, #tpu.memory_space<vmem>>, %arg6: memref<64x128xf32, #tpu.memory_space<vmem>>, %arg7: memref<64x1xf32, #tpu.memory_space<vmem>>, %arg8: memref<32x64xf32, #tpu.memory_space<vmem>>, %arg9: memref<32x1xf32, #tpu.memory_space<vmem>>, %arg10: memref<16x32xf32, #tpu.memory_space<vmem>>, %arg11: memref<16x1xf32, #tpu.memory_space<vmem>>, %arg12: memref<32x16xf32, #tpu.memory_space<vmem>>, %arg13: memref<32x1xf32, #tpu.memory_space<vmem>>, %arg14: memref<32x32xf32, #tpu.memory_space<vmem>>, %arg15: memref<32x1xf32, #tpu.memory_space<vmem>>, %arg16: memref<16x32xf32, #tpu.memory_space<vmem>>, %arg17: memref<16x1xf32, #tpu.memory_space<vmem>>, %arg18: memref<16x1xf32, #tpu.memory_space<vmem>>, %arg19: memref<1x1xf32, #tpu.memory_space<smem>>, %arg20: memref<32x128xf32, #tpu.memory_space<vmem>>, %arg21: memref<1x128xf32, #tpu.memory_space<vmem>>) attributes {dimension_semantics = [#tpu.dimension_semantics<parallel>], iteration_bounds = array<i64: 1>, scalar_prefetch = 0 : i64, scratch_operands = 0 : i64, tpu.core_type = #tpu.core_type<tc>, window_params = [{transform_indices = @transform_0, window_bounds = array<i64: 128, 128>}, {pipeline_mode = #tpu.pipeline_mode<synchronous>, transform_indices = @transform_1, window_bounds = array<i64: 256, 128>}, {pipeline_mode = #tpu.pipeline_mode<synchronous>, transform_indices = @transform_2, window_bounds = array<i64: 256, 1>}, {pipeline_mode = #tpu.pipeline_mode<synchronous>, transform_indices = @transform_3, window_bounds = array<i64: 128, 256>}, {pipeline_mode = #tpu.pipeline_mode<synchronous>, transform_indices = @transform_4, window_bounds = array<i64: 128, 1>}, {pipeline_mode = #tpu.pipeline_mode<synchronous>, transform_indices = @transform_5, window_bounds = array<i64: 64, 128>}, {pipeline_mode = #tpu.pipeline_mode<synchronous>, transform_indices = @transform_6, window_bounds = array<i64: 64, 1>}, {pipeline_mode = #tpu.pipeline_mode<synchronous>, transform_indices = @transform_7, window_bounds = array<i64: 32, 64>}, {pipeline_mode = #tpu.pipeline_mode<synchronous>, transform_indices = @transform_8, window_bounds = array<i64: 32, 1>}, {pipeline_mode = #tpu.pipeline_mode<synchronous>, transform_indices = @transform_9, window_bounds = array<i64: 16, 32>}, {pipeline_mode = #tpu.pipeline_mode<synchronous>, transform_indices = @transform_10, window_bounds = array<i64: 16, 1>}, {pipeline_mode = #tpu.pipeline_mode<synchronous>, transform_indices = @transform_11, window_bounds = array<i64: 32, 16>}, {pipeline_mode = #tpu.pipeline_mode<synchronous>, transform_indices = @transform_12, window_bounds = array<i64: 32, 1>}, {pipeline_mode = #tpu.pipeline_mode<synchronous>, transform_indices = @transform_13, window_bounds = array<i64: 32, 32>}, {pipeline_mode = #tpu.pipeline_mode<synchronous>, transform_indices = @transform_14, window_bounds = array<i64: 32, 1>}, {pipeline_mode = #tpu.pipeline_mode<synchronous>, transform_indices = @transform_15, window_bounds = array<i64: 16, 32>}, {pipeline_mode = #tpu.pipeline_mode<synchronous>, transform_indices = @transform_16, window_bounds = array<i64: 16, 1>}, {pipeline_mode = #tpu.pipeline_mode<synchronous>, transform_indices = @transform_17, window_bounds = array<i64: 16, 1>}, {transform_indices = @transform_18, window_bounds = array<i64: 1, 1>}, {transform_indices = @transform_19, window_bounds = array<i64: 32, 128>}, {transform_indices = @transform_20, window_bounds = array<i64: 1, 128>}]} {
    %c0 = arith.constant 0 : index
    %c0_0 = arith.constant 0 : index
    %0 = vector.load %arg2[%c0, %c0_0] : memref<256x128xf32, #tpu.memory_space<vmem>>, vector<256x128xf32>
    %c0_1 = arith.constant 0 : index
    %c0_2 = arith.constant 0 : index
    %1 = vector.load %arg1[%c0_1, %c0_2] : memref<128x128xf32, #tpu.memory_space<vmem>>, vector<128x128xf32>
    %cst = arith.constant dense<0.000000e+00> : vector<256x128xf32>
    %2 = tpu.matmul %0, %1, %cst {dimension_numbers = #tpu.dot_dimension_numbers<[1], [1], [0], [0], [0, 0, 1, 0], [], []>} : vector<256x128xf32>, vector<128x128xf32>, vector<256x128xf32> -> vector<256x128xf32>
    %c0_3 = arith.constant 0 : index
    %c0_4 = arith.constant 0 : index
    %3 = vector.load %arg3[%c0_3, %c0_4] : memref<256x1xf32, #tpu.memory_space<vmem>>, vector<256x1xf32>
    %4 = vector.broadcast %3 : vector<256x1xf32> to vector<256x128xf32>
    %5 = arith.addf %2, %4 : vector<256x128xf32>
    %cst_5 = arith.constant 0.000000e+00 : f32
    %6 = vector.broadcast %cst_5 : f32 to vector<256x128xf32>
    %7 = arith.maximumf %5, %6 : vector<256x128xf32>
    %c0_6 = arith.constant 0 : index
    %c0_7 = arith.constant 0 : index
    %8 = vector.load %arg4[%c0_6, %c0_7] : memref<128x256xf32, #tpu.memory_space<vmem>>, vector<128x256xf32>
    %cst_8 = arith.constant dense<0.000000e+00> : vector<128x128xf32>
    %9 = tpu.matmul %8, %7, %cst_8 {dimension_numbers = #tpu.dot_dimension_numbers<[1], [0], [0], [1], [0, 0, 1, 1], [], []>} : vector<128x256xf32>, vector<256x128xf32>, vector<128x128xf32> -> vector<128x128xf32>
    %c0_9 = arith.constant 0 : index
    %c0_10 = arith.constant 0 : index
    %10 = vector.load %arg5[%c0_9, %c0_10] : memref<128x1xf32, #tpu.memory_space<vmem>>, vector<128x1xf32>
    %11 = vector.broadcast %10 : vector<128x1xf32> to vector<128x128xf32>
    %12 = arith.addf %9, %11 : vector<128x128xf32>
    %cst_11 = arith.constant 0.000000e+00 : f32
    %13 = vector.broadcast %cst_11 : f32 to vector<128x128xf32>
    %14 = arith.maximumf %12, %13 : vector<128x128xf32>
    %c0_12 = arith.constant 0 : index
    %c0_13 = arith.constant 0 : index
    %15 = vector.load %arg6[%c0_12, %c0_13] : memref<64x128xf32, #tpu.memory_space<vmem>>, vector<64x128xf32>
    %cst_14 = arith.constant dense<0.000000e+00> : vector<64x128xf32>
    %16 = tpu.matmul %15, %14, %cst_14 {dimension_numbers = #tpu.dot_dimension_numbers<[1], [0], [0], [1], [0, 0, 1, 1], [], []>} : vector<64x128xf32>, vector<128x128xf32>, vector<64x128xf32> -> vector<64x128xf32>
    %c0_15 = arith.constant 0 : index
    %c0_16 = arith.constant 0 : index
    %17 = vector.load %arg7[%c0_15, %c0_16] : memref<64x1xf32, #tpu.memory_space<vmem>>, vector<64x1xf32>
    %18 = vector.broadcast %17 : vector<64x1xf32> to vector<64x128xf32>
    %19 = arith.addf %16, %18 : vector<64x128xf32>
    %cst_17 = arith.constant 0.000000e+00 : f32
    %20 = vector.broadcast %cst_17 : f32 to vector<64x128xf32>
    %21 = arith.maximumf %19, %20 : vector<64x128xf32>
    %c0_18 = arith.constant 0 : index
    %c0_19 = arith.constant 0 : index
    %22 = vector.load %arg8[%c0_18, %c0_19] : memref<32x64xf32, #tpu.memory_space<vmem>>, vector<32x64xf32>
    %cst_20 = arith.constant dense<0.000000e+00> : vector<32x128xf32>
    %23 = tpu.matmul %22, %21, %cst_20 {dimension_numbers = #tpu.dot_dimension_numbers<[1], [0], [0], [1], [0, 0, 1, 1], [], []>} : vector<32x64xf32>, vector<64x128xf32>, vector<32x128xf32> -> vector<32x128xf32>
    %c0_21 = arith.constant 0 : index
    %c0_22 = arith.constant 0 : index
    %24 = vector.load %arg9[%c0_21, %c0_22] : memref<32x1xf32, #tpu.memory_space<vmem>>, vector<32x1xf32>
    %25 = vector.broadcast %24 : vector<32x1xf32> to vector<32x128xf32>
    %26 = arith.addf %23, %25 : vector<32x128xf32>
    %cst_23 = arith.constant 0.000000e+00 : f32
    %27 = vector.broadcast %cst_23 : f32 to vector<32x128xf32>
    %28 = arith.maximumf %26, %27 : vector<32x128xf32>
    %c0_24 = arith.constant 0 : index
    %c0_25 = arith.constant 0 : index
    %29 = vector.load %arg10[%c0_24, %c0_25] : memref<16x32xf32, #tpu.memory_space<vmem>>, vector<16x32xf32>
    %cst_26 = arith.constant dense<0.000000e+00> : vector<16x128xf32>
    %30 = tpu.matmul %29, %28, %cst_26 {dimension_numbers = #tpu.dot_dimension_numbers<[1], [0], [0], [1], [0, 0, 1, 1], [], []>} : vector<16x32xf32>, vector<32x128xf32>, vector<16x128xf32> -> vector<16x128xf32>
    %c0_27 = arith.constant 0 : index
    %c0_28 = arith.constant 0 : index
    %31 = vector.load %arg11[%c0_27, %c0_28] : memref<16x1xf32, #tpu.memory_space<vmem>>, vector<16x1xf32>
    %32 = vector.broadcast %31 : vector<16x1xf32> to vector<16x128xf32>
    %33 = arith.addf %30, %32 : vector<16x128xf32>
    %cst_29 = arith.constant 0.000000e+00 : f32
    %34 = vector.broadcast %cst_29 : f32 to vector<16x128xf32>
    %35 = arith.maximumf %33, %34 : vector<16x128xf32>
    %c0_30 = arith.constant 0 : index
    %c0_31 = arith.constant 0 : index
    %36 = vector.load %arg12[%c0_30, %c0_31] : memref<32x16xf32, #tpu.memory_space<vmem>>, vector<32x16xf32>
    %cst_32 = arith.constant dense<0.000000e+00> : vector<32x128xf32>
    %37 = tpu.matmul %36, %35, %cst_32 {dimension_numbers = #tpu.dot_dimension_numbers<[1], [0], [0], [1], [0, 0, 1, 1], [], []>} : vector<32x16xf32>, vector<16x128xf32>, vector<32x128xf32> -> vector<32x128xf32>
    %c0_33 = arith.constant 0 : index
    %c0_34 = arith.constant 0 : index
    %38 = vector.load %arg13[%c0_33, %c0_34] : memref<32x1xf32, #tpu.memory_space<vmem>>, vector<32x1xf32>
    %39 = vector.broadcast %38 : vector<32x1xf32> to vector<32x128xf32>
    %40 = arith.addf %37, %39 : vector<32x128xf32>
    %c0_35 = arith.constant 0 : index
    %c0_36 = arith.constant 0 : index
    %41 = vector.load %arg20[%c0_35, %c0_36] : memref<32x128xf32, #tpu.memory_space<vmem>>, vector<32x128xf32>
    tpu.vector_store %arg20[%c0_35, %c0_36], %40 {strides = array<i32>} : memref<32x128xf32, #tpu.memory_space<vmem>>, vector<32x128xf32>,
    %c0_37 = arith.constant 0 : index
    %c0_38 = arith.constant 0 : index
    %42 = vector.load %arg14[%c0_37, %c0_38] : memref<32x32xf32, #tpu.memory_space<vmem>>, vector<32x32xf32>
    %cst_39 = arith.constant dense<0.000000e+00> : vector<32x128xf32>
    %43 = tpu.matmul %42, %40, %cst_39 {dimension_numbers = #tpu.dot_dimension_numbers<[1], [0], [0], [1], [0, 0, 1, 1], [], []>} : vector<32x32xf32>, vector<32x128xf32>, vector<32x128xf32> -> vector<32x128xf32>
    %c0_40 = arith.constant 0 : index
    %c0_41 = arith.constant 0 : index
    %44 = vector.load %arg15[%c0_40, %c0_41] : memref<32x1xf32, #tpu.memory_space<vmem>>, vector<32x1xf32>
    %45 = vector.broadcast %44 : vector<32x1xf32> to vector<32x128xf32>
    %46 = arith.addf %43, %45 : vector<32x128xf32>
    %cst_42 = arith.constant 0.000000e+00 : f32
    %47 = vector.broadcast %cst_42 : f32 to vector<32x128xf32>
    %48 = arith.maximumf %46, %47 : vector<32x128xf32>
    %c0_43 = arith.constant 0 : index
    %c0_44 = arith.constant 0 : index
    %49 = vector.load %arg16[%c0_43, %c0_44] : memref<16x32xf32, #tpu.memory_space<vmem>>, vector<16x32xf32>
    %cst_45 = arith.constant dense<0.000000e+00> : vector<16x128xf32>
    %50 = tpu.matmul %49, %48, %cst_45 {dimension_numbers = #tpu.dot_dimension_numbers<[1], [0], [0], [1], [0, 0, 1, 1], [], []>} : vector<16x32xf32>, vector<32x128xf32>, vector<16x128xf32> -> vector<16x128xf32>
    %c0_46 = arith.constant 0 : index
    %c0_47 = arith.constant 0 : index
    %51 = vector.load %arg17[%c0_46, %c0_47] : memref<16x1xf32, #tpu.memory_space<vmem>>, vector<16x1xf32>
    %52 = vector.broadcast %51 : vector<16x1xf32> to vector<16x128xf32>
    %53 = arith.addf %50, %52 : vector<16x128xf32>
    %cst_48 = arith.constant 0.000000e+00 : f32
    %54 = vector.broadcast %cst_48 : f32 to vector<16x128xf32>
    %55 = arith.maximumf %53, %54 : vector<16x128xf32>
    %c0_49 = arith.constant 0 : index
    %c0_50 = arith.constant 0 : index
    %56 = vector.load %arg18[%c0_49, %c0_50] : memref<16x1xf32, #tpu.memory_space<vmem>>, vector<16x1xf32>
    %57 = vector.broadcast %56 : vector<16x1xf32> to vector<16x128xf32>
    %58 = arith.mulf %57, %55 : vector<16x128xf32>
    %cst_51 = arith.constant dense<0.000000e+00> : vector<128xf32>
    %59 = vector.multi_reduction <add>, %58, %cst_51 [0] : vector<16x128xf32> to vector<128xf32>
    %60 = vector.shape_cast %59 : vector<128xf32> to vector<1x128xf32>
    %c0_52 = arith.constant 0 : index
    %c0_53 = arith.constant 0 : index
    %61 = memref.load %arg19[%c0_52, %c0_53] : memref<1x1xf32, #tpu.memory_space<smem>>
    %62 = vector.broadcast %61 : f32 to vector<1x128xf32>
    %63 = arith.addf %60, %62 : vector<1x128xf32>
    %c0_54 = arith.constant 0 : index
    %c0_55 = arith.constant 0 : index
    %64 = vector.load %arg21[%c0_54, %c0_55] : memref<1x128xf32, #tpu.memory_space<vmem>>, vector<1x128xf32>
    tpu.vector_store %arg21[%c0_54, %c0_55], %63 {strides = array<i32>} : memref<1x128xf32, #tpu.memory_space<vmem>>, vector<1x128xf32>,
    return
  }
  func.func @transform_0(%arg0: i32) -> (i32, i32) {
    %c0_i32 = arith.constant 0 : i32
    %c0_i32_0 = arith.constant 0 : i32
    return %arg0, %c0_i32 : i32, i32
  }
  func.func @transform_1(%arg0: i32) -> (i32, i32) {
    %c0_i32 = arith.constant 0 : i32
    %c0_i32_0 = arith.constant 0 : i32
    %c0_i32_1 = arith.constant 0 : i32
    return %c0_i32, %c0_i32_0 : i32, i32
  }
  func.func @transform_2(%arg0: i32) -> (i32, i32) {
    %c0_i32 = arith.constant 0 : i32
    %c0_i32_0 = arith.constant 0 : i32
    %c0_i32_1 = arith.constant 0 : i32
    return %c0_i32, %c0_i32_0 : i32, i32
  }
  func.func @transform_3(%arg0: i32) -> (i32, i32) {
    %c0_i32 = arith.constant 0 : i32
    %c0_i32_0 = arith.constant 0 : i32
    %c0_i32_1 = arith.constant 0 : i32
    return %c0_i32, %c0_i32_0 : i32, i32
  }
  func.func @transform_4(%arg0: i32) -> (i32, i32) {
    %c0_i32 = arith.constant 0 : i32
    %c0_i32_0 = arith.constant 0 : i32
    %c0_i32_1 = arith.constant 0 : i32
    return %c0_i32, %c0_i32_0 : i32, i32
  }
  func.func @transform_5(%arg0: i32) -> (i32, i32) {
    %c0_i32 = arith.constant 0 : i32
    %c0_i32_0 = arith.constant 0 : i32
    %c0_i32_1 = arith.constant 0 : i32
    return %c0_i32, %c0_i32_0 : i32, i32
  }
  func.func @transform_6(%arg0: i32) -> (i32, i32) {
    %c0_i32 = arith.constant 0 : i32
    %c0_i32_0 = arith.constant 0 : i32
    %c0_i32_1 = arith.constant 0 : i32
    return %c0_i32, %c0_i32_0 : i32, i32
  }
  func.func @transform_7(%arg0: i32) -> (i32, i32) {
    %c0_i32 = arith.constant 0 : i32
    %c0_i32_0 = arith.constant 0 : i32
    %c0_i32_1 = arith.constant 0 : i32
    return %c0_i32, %c0_i32_0 : i32, i32
  }
  func.func @transform_8(%arg0: i32) -> (i32, i32) {
    %c0_i32 = arith.constant 0 : i32
    %c0_i32_0 = arith.constant 0 : i32
    %c0_i32_1 = arith.constant 0 : i32
    return %c0_i32, %c0_i32_0 : i32, i32
  }
  func.func @transform_9(%arg0: i32) -> (i32, i32) {
    %c0_i32 = arith.constant 0 : i32
    %c0_i32_0 = arith.constant 0 : i32
    %c0_i32_1 = arith.constant 0 : i32
    return %c0_i32, %c0_i32_0 : i32, i32
  }
  func.func @transform_10(%arg0: i32) -> (i32, i32) {
    %c0_i32 = arith.constant 0 : i32
    %c0_i32_0 = arith.constant 0 : i32
    %c0_i32_1 = arith.constant 0 : i32
    return %c0_i32, %c0_i32_0 : i32, i32
  }
  func.func @transform_11(%arg0: i32) -> (i32, i32) {
    %c0_i32 = arith.constant 0 : i32
    %c0_i32_0 = arith.constant 0 : i32
    %c0_i32_1 = arith.constant 0 : i32
    return %c0_i32, %c0_i32_0 : i32, i32
  }
  func.func @transform_12(%arg0: i32) -> (i32, i32) {
    %c0_i32 = arith.constant 0 : i32
    %c0_i32_0 = arith.constant 0 : i32
    %c0_i32_1 = arith.constant 0 : i32
    return %c0_i32, %c0_i32_0 : i32, i32
  }
  func.func @transform_13(%arg0: i32) -> (i32, i32) {
    %c0_i32 = arith.constant 0 : i32
    %c0_i32_0 = arith.constant 0 : i32
    %c0_i32_1 = arith.constant 0 : i32
    return %c0_i32, %c0_i32_0 : i32, i32
  }
  func.func @transform_14(%arg0: i32) -> (i32, i32) {
    %c0_i32 = arith.constant 0 : i32
    %c0_i32_0 = arith.constant 0 : i32
    %c0_i32_1 = arith.constant 0 : i32
    return %c0_i32, %c0_i32_0 : i32, i32
  }
  func.func @transform_15(%arg0: i32) -> (i32, i32) {
    %c0_i32 = arith.constant 0 : i32
    %c0_i32_0 = arith.constant 0 : i32
    %c0_i32_1 = arith.constant 0 : i32
    return %c0_i32, %c0_i32_0 : i32, i32
  }
  func.func @transform_16(%arg0: i32) -> (i32, i32) {
    %c0_i32 = arith.constant 0 : i32
    %c0_i32_0 = arith.constant 0 : i32
    %c0_i32_1 = arith.constant 0 : i32
    return %c0_i32, %c0_i32_0 : i32, i32
  }
  func.func @transform_17(%arg0: i32) -> (i32, i32) {
    %c0_i32 = arith.constant 0 : i32
    %c0_i32_0 = arith.constant 0 : i32
    %c0_i32_1 = arith.constant 0 : i32
    return %c0_i32, %c0_i32_0 : i32, i32
  }
  func.func @transform_18(%arg0: i32) -> (i32, i32) {
    %c0_i32 = arith.constant 0 : i32
    %c0_i32_0 = arith.constant 0 : i32
    %c0_i32_1 = arith.constant 0 : i32
    return %c0_i32, %c0_i32_0 : i32, i32
  }
  func.func @transform_19(%arg0: i32) -> (i32, i32) {
    %c0_i32 = arith.constant 0 : i32
    %c0_i32_0 = arith.constant 0 : i32
    return %c0_i32, %arg0 : i32, i32
  }
  func.func @transform_20(%arg0: i32) -> (i32, i32) {
    %c0_i32 = arith.constant 0 : i32
    %c0_i32_0 = arith.constant 0 : i32
    return %c0_i32, %arg0 : i32, i32
  }
}

</mosaic_0001>

<bundles_post_ra>
// kernel: cnn_forward.1
= control target key start
LH: loop header
LB: loop body
LE: loop exit
PB: predicated region body
PF: predicated region fallthrough
CT: control target
= control target key end

     0   :  { %v1242_v0 = vmov 0   ;;  %vm857_vm0 = vcmask 523264   ;;  %vm917_vm1 = vcmask 261120   ;;  %vm977_vm2 = vcmask 130048   ;;  %s2061_s2 = inlined_call_operand.vmem [shape: f32[256,1], index: 2, kind: input, shape index: {}]   ;;  %s2062_s0 = inlined_call_operand.vmem [shape: f32[128,128], index: 0, kind: input, shape index: {}]   ;;  %s2063_s1 = inlined_call_operand.vmem [shape: f32[256,128], index: 1, kind: input, shape index: {}]   ;;  %s2064_s4 = inlined_call_operand.vmem [shape: f32[128,1], index: 4, kind: input, shape index: {}]   ;;  %s2065_s6 = inlined_call_operand.vmem [shape: f32[64,1], index: 6, kind: input, shape index: {}]   ;;  %s2066_s8 = inlined_call_operand.vmem [shape: f32[32,1], index: 8, kind: input, shape index: {}]   ;;  %s2067_s10 = inlined_call_operand.vmem [shape: f32[16,1], index: 10, kind: input, shape index: {}]   ;;  %s2068_s12 = inlined_call_operand.vmem [shape: f32[32,1], index: 12, kind: input, shape index: {}]   ;;  %s2069_s14 = inlined_call_operand.vmem [shape: f32[32,1], index: 14, kind: input, shape index: {}]   ;;  %s2070_s16 = inlined_call_operand.vmem [shape: f32[16,1], index: 16, kind: input, shape index: {}]   ;;  %s2071_s17 = inlined_call_operand.vmem [shape: f32[16,1], index: 17, kind: input, shape index: {}]   ;;  %s2072_s3 = inlined_call_operand.vmem [shape: f32[128,256], index: 3, kind: input, shape index: {}]   ;;  %s2073_s5 = inlined_call_operand.vmem [shape: f32[64,128], index: 5, kind: input, shape index: {}]   ;;  %s2074_s7 = inlined_call_operand.vmem [shape: f32[32,64], index: 7, kind: input, shape index: {}]   ;;  %s2075_s9 = inlined_call_operand.vmem [shape: f32[16,32], index: 9, kind: input, shape index: {}]   ;;  %s2076_s11 = inlined_call_operand.vmem [shape: f32[32,16], index: 11, kind: input, shape index: {}]   ;;  %s2077_s19 = inlined_call_operand.vmem [shape: f32[32,128], index: 19, kind: output, shape index: {0}]   ;;  %s2078_s13 = inlined_call_operand.vmem [shape: f32[32,32], index: 13, kind: input, shape index: {}]   ;;  %s2079_s15 = inlined_call_operand.vmem [shape: f32[16,32], index: 15, kind: input, shape index: {}]   ;;  %s2080_s18 = inlined_call_operand.<no memory space> [shape: f32[1,1], index: 18, kind: input, shape index: {}]   ;;  %s2081_s20 = inlined_call_operand.vmem [shape: f32[1,128], index: 20, kind: output, shape index: {1}]  }
   0x1   :  { %2087 = sst [smem:[#allocation3_spill]] %s2061_s2  ;;  %1240 = vset.pattern.permute.xlu1 %v1242_v0  ;;  %1239 = vset.pattern.permute.xlu0 %v1242_v0 }
   0x2   :  { %2088 = sst [smem:[#allocation4_spill]] %s2062_s0  ;;  %1241 = vset.pattern.permute.xlu2 %v1242_v0 }
   0x3   :  { %2089 = sst [smem:[#allocation5_spill]] %s2063_s1 }
   0x4   :  { %2090 = sst [smem:[#allocation6_spill]] %s2064_s4 }
   0x5   :  { %2091 = sst [smem:[#allocation7_spill]] %s2065_s6 }
   0x6   :  { %s2092_s23 = sld [smem:[#allocation3_spill]] }
   0x7   :  { %s2093_s26 = sld [smem:[#allocation4_spill]] }
   0x8   :  { %s2094_s25 = sld [smem:[#allocation5_spill]] }
   0x9   :  { %s2095_s28 = sld [smem:[#allocation6_spill]] }
   0xa   :  { %s2096_s2 = sld [smem:[#allocation7_spill]] }
   0xc   :  { %v128_v1 = vld [vmem:[%s2092_s23 + $0x78] sm:$0xff]  ;;  %v126_v2 = vld [vmem:[%s2092_s23 + $0x68] sm:$0xff]  ;;  %v127_v6 = vld [vmem:[%s2092_s23 + $0x70] sm:$0xff] }
   0xd   :  { %v112_v3 = vld [vmem:[%s2093_s26 + $0x78] sm:$0xff]  ;;  %222 = vperm.xlu0 %1239, %v128_v1   ;;  %212 = vperm.xlu1 %1240, %v126_v2   ;;  %v111_v4 = vld [vmem:[%s2093_s26 + $0x70] sm:$0xff]  ;;  %v125_v7 = vld [vmem:[%s2092_s23 + $0x60] sm:$0xff] }
   0xe   :  { %305 = vmatpush.xpose.msra.mxu0 %v112_v3  ;;  %1190 = vmatpush.xpose.msra.mxu2 %v112_v3  ;;  %v124_v5 = vld [vmem:[%s2092_s23 + $0x58] sm:$0xff]  ;;  %v110_v8 = vld [vmem:[%s2093_s26 + $0x68] sm:$0xff]  ;;  %v109_v9 = vld [vmem:[%s2093_s26 + $0x60] sm:$0xff] }
   0xf   :  { %202 = vperm.xlu2 %1241, %v124_v5   ;;  %v123_v10 = vld [vmem:[%s2092_s23 + $0x50] sm:$0xff]  ;;  %v122_v11 = vld [vmem:[%s2092_s23 + $0x48] sm:$0xff]  ;;  %v121_v12 = vld [vmem:[%s2092_s23 + $0x40] sm:$0xff] }
  0x10   :  { %v108_v13 = vld [vmem:[%s2093_s26 + $0x58] sm:$0xff]  ;;  %v107_v14 = vld [vmem:[%s2093_s26 + $0x50] sm:$0xff]  ;;  %v118_v17 = vld [vmem:[%s2092_s23 + $0x28] sm:$0xff] }
  0x11   :  { %v120_v15 = vld [vmem:[%s2092_s23 + $0x38] sm:$0xff]  ;;  %v119_v16 = vld [vmem:[%s2092_s23 + $0x30] sm:$0xff]  ;;  %v106_v18 = vld [vmem:[%s2093_s26 + $0x48] sm:$0xff] }
  0x12   :  { %306 = vmatpush.xpose.msra.mxu0 %v111_v4  ;;  %1191 = vmatpush.xpose.msra.mxu2 %v111_v4  ;;  %v105_v19 = vld [vmem:[%s2093_s26 + $0x40] sm:$0xff]  ;;  %v116_v21 = vld [vmem:[%s2092_s23 + $0x18] sm:$0xff]  ;;  %v115_v22 = vld [vmem:[%s2092_s23 + $0x10] sm:$0xff] }
  0x13   :  { %v117_v20 = vld [vmem:[%s2092_s23 + $0x20] sm:$0xff]  ;;  %v104_v23 = vld [vmem:[%s2093_s26 + $0x38] sm:$0xff]  ;;  %v103_v24 = vld [vmem:[%s2093_s26 + $0x30] sm:$0xff] }
  0x14   :  { %v114_v25 = vld [vmem:[%s2092_s23 + $0x8] sm:$0xff]  ;;  %v144_v26 = vld [vmem:[%s2092_s23 + $0xf8] sm:$0xff]  ;;  %v113_v27 = vld [vmem:[%s2092_s23] sm:$0xff] }
  0x15   :  { %217 = vperm.xlu0 %1239, %v127_v6   ;;  %207 = vperm.xlu1 %1240, %v125_v7   ;;  %v102_v28 = vld [vmem:[%s2093_s26 + $0x28] sm:$0xff]  ;;  %v101_v29 = vld [vmem:[%s2093_s26 + $0x20] sm:$0xff]  ;;  %v143_v30 = vld [vmem:[%s2092_s23 + $0xf0] sm:$0xff] }
  0x16   :  { %307 = vmatpush.xpose.msra.mxu0 %v110_v8  ;;  %1192 = vmatpush.xpose.msra.mxu2 %v110_v8  ;;  %v141_v31 = vld [vmem:[%s2092_s23 + $0xe0] sm:$0xff]  ;;  %v142_v32 = vld [vmem:[%s2092_s23 + $0xe8] sm:$0xff]  ;;  %v100_v33 = vld [vmem:[%s2093_s26 + $0x18] sm:$0xff] }
  0x17   :  { %197 = vperm.xlu2 %1241, %v123_v10   ;;  %v99_v34 = vld [vmem:[%s2093_s26 + $0x10] sm:$0xff]  ;;  %v140_v35 = vld [vmem:[%s2092_s23 + $0xd8] sm:$0xff]  ;;  %v138_v36 = vld [vmem:[%s2092_s23 + $0xc8] sm:$0xff] }
  0x18   :  { %v139_v37 = vld [vmem:[%s2092_s23 + $0xd0] sm:$0xff]  ;;  %v98_v38 = vld [vmem:[%s2093_s26 + $0x8] sm:$0xff]  ;;  %v97_v39 = vld [vmem:[%s2093_s26] sm:$0xff] }
  0x19   :  { %v137_v40 = vld [vmem:[%s2092_s23 + $0xc0] sm:$0xff]  ;;  %v135_v43 = vld [vmem:[%s2092_s23 + $0xb0] sm:$0xff]  ;;  %v136_v44 = vld [vmem:[%s2092_s23 + $0xb8] sm:$0xff] }
  0x1a   :  { %308 = vmatpush.xpose.msra.mxu0 %v109_v9  ;;  %1193 = vmatpush.xpose.msra.mxu2 %v109_v9  ;;  %v65_v41 = vld [vmem:[%s2094_s25] sm:$0xff]  ;;  %v134_v45 = vld [vmem:[%s2092_s23 + $0xa8] sm:$0xff]  ;;  %v132_v48 = vld [vmem:[%s2092_s23 + $0x98] sm:$0xff] }
  0x1b   :  { %v85_v42 = vld [vmem:[%s2094_s25 + $0xa0] sm:$0xff]  ;;  %v66_v46 = vld [vmem:[%s2094_s25 + $0x8] sm:$0xff]  ;;  %v131_v50 = vld [vmem:[%s2092_s23 + $0x90] sm:$0xff] }
  0x1c   :  { %v86_v47 = vld [vmem:[%s2094_s25 + $0xa8] sm:$0xff]  ;;  %v133_v49 = vld [vmem:[%s2092_s23 + $0xa0] sm:$0xff]  ;;  %v67_v51 = vld [vmem:[%s2094_s25 + $0x10] sm:$0xff] }
  0x1d   :  { %192 = vperm.xlu0 %1239, %v122_v11   ;;  %187 = vperm.xlu1 %1240, %v121_v12   ;;  %v87_v52 = vld [vmem:[%s2094_s25 + $0xb0] sm:$0xff]  ;;  %v129_v53 = vld [vmem:[%s2092_s23 + $0x80] sm:$0xff]  ;;  %v130_v54 = vld [vmem:[%s2092_s23 + $0x88] sm:$0xff] }
  0x1e   :  { %309 = vmatpush.xpose.msra.mxu0 %v108_v13  ;;  %1194 = vmatpush.xpose.msra.mxu2 %v108_v13  ;;  %v497_v55 = vld [vmem:[%s2095_s28 + $0x78] sm:$0xff]  ;;  %v495_v58 = vld [vmem:[%s2095_s28 + $0x68] sm:$0xff]  ;;  %v496_v59 = vld [vmem:[%s2095_s28 + $0x70] sm:$0xff] }
  0x1f   :  { %182 = vperm.xlu2 %1241, %v120_v15   ;;  %v68_v56 = vld [vmem:[%s2094_s25 + $0x18] sm:$0xff]  ;;  %v494_v60 = vld [vmem:[%s2095_s28 + $0x60] sm:$0xff]  ;;  %v492_v63 = vld [vmem:[%s2095_s28 + $0x50] sm:$0xff] }
  0x20   :  { %v88_v57 = vld [vmem:[%s2094_s25 + $0xb8] sm:$0xff]  ;;  %v69_v61 = vld [vmem:[%s2094_s25 + $0x20] sm:$0xff]  ;;  %v491_v1 = vld [vmem:[%s2095_s28 + $0x48] sm:$0xff] }
  0x21   :  { %v89_v62 = vld [vmem:[%s2094_s25 + $0xc0] sm:$0xff]  ;;  %v493_v0 = vld [vmem:[%s2095_s28 + $0x58] sm:$0xff]  ;;  %v70_v2 = vld [vmem:[%s2094_s25 + $0x28] sm:$0xff] }
  0x22   :  { %310 = vmatpush.xpose.msra.mxu0 %v107_v14  ;;  %1195 = vmatpush.xpose.msra.mxu2 %v107_v14  ;;  %v90_v3 = vld [vmem:[%s2094_s25 + $0xc8] sm:$0xff]  ;;  %v489_v4 = vld [vmem:[%s2095_s28 + $0x38] sm:$0xff]  ;;  %v490_v5 = vld [vmem:[%s2095_s28 + $0x40] sm:$0xff] }
  0x23   :  { %v488_v6 = vld [vmem:[%s2095_s28 + $0x30] sm:$0xff]  ;;  %v486_v9 = vld [vmem:[%s2095_s28 + $0x20] sm:$0xff]  ;;  %v487_v10 = vld [vmem:[%s2095_s28 + $0x28] sm:$0xff] }
  0x24   :  { %v71_v7 = vld [vmem:[%s2094_s25 + $0x30] sm:$0xff]  ;;  %v485_v11 = vld [vmem:[%s2095_s28 + $0x18] sm:$0xff]  ;;  %v483_v14 = vld [vmem:[%s2095_s28 + $0x8] sm:$0xff] }
  0x25   :  { %177 = vperm.xlu0 %1239, %v119_v16   ;;  %172 = vperm.xlu1 %1240, %v118_v17   ;;  %v91_v8 = vld [vmem:[%s2094_s25 + $0xd0] sm:$0xff]  ;;  %v72_v12 = vld [vmem:[%s2094_s25 + $0x38] sm:$0xff]  ;;  %v482_v16 = vld [vmem:[%s2095_s28] sm:$0xff] }
  0x26   :  { %311 = vmatpush.xpose.msra.mxu0 %v106_v18  ;;  %1196 = vmatpush.xpose.msra.mxu2 %v106_v18  ;;  %v92_v13 = vld [vmem:[%s2094_s25 + $0xd8] sm:$0xff]  ;;  %v484_v15 = vld [vmem:[%s2095_s28 + $0x10] sm:$0xff]  ;;  %v73_v17 = vld [vmem:[%s2094_s25 + $0x40] sm:$0xff] }
  0x27   :  { %167 = vperm.xlu2 %1241, %v117_v20   ;;  %v93_v18 = vld [vmem:[%s2094_s25 + $0xe0] sm:$0xff]  ;;  %v739_v20 = vld [vmem:[%s2096_s2 + $0x38] sm:$0xff] }
  0x2a   :  { %312 = vmatpush.xpose.msra.mxu0 %v105_v19  ;;  %1197 = vmatpush.xpose.msra.mxu2 %v105_v19  ;;  %v738_v19 = vld [vmem:[%s2096_s2 + $0x30] sm:$0xff] }
  0x2d   :  { %162 = vperm.xlu0 %1239, %v116_v21   ;;  %157 = vperm.xlu1 %1240, %v115_v22   ;;  %v737_v21 = vld [vmem:[%s2096_s2 + $0x28] sm:$0xff] }
  0x2e   :  { %313 = vmatpush.xpose.msra.mxu0 %v104_v23  ;;  %1198 = vmatpush.xpose.msra.mxu2 %v104_v23  ;;  %v74_v22 = vld [vmem:[%s2094_s25 + $0x48] sm:$0xff] }
  0x2f   :  { %152 = vperm.xlu2 %1241, %v114_v25   ;;  %v94_v23 = vld [vmem:[%s2094_s25 + $0xe8] sm:$0xff]  ;;  %v736_v25 = vld [vmem:[%s2096_s2 + $0x20] sm:$0xff] }
  0x32   :  { %314 = vmatpush.xpose.msra.mxu0 %v103_v24  ;;  %1199 = vmatpush.xpose.msra.mxu2 %v103_v24  ;;  %v735_v24 = vld [vmem:[%s2096_s2 + $0x18] sm:$0xff] }
  0x35   :  { %302 = vperm.xlu1 %1240, %v144_v26   ;;  %147 = vperm.xlu0 %1239, %v113_v27   ;;  %v734_v27 = vld [vmem:[%s2096_s2 + $0x10] sm:$0xff] }
  0x36   :  { %315 = vmatpush.xpose.msra.mxu0 %v102_v28  ;;  %1200 = vmatpush.xpose.msra.mxu2 %v102_v28  ;;  %v75_v28 = vld [vmem:[%s2094_s25 + $0x50] sm:$0xff] }
  0x37   :  { %297 = vperm.xlu2 %1241, %v143_v30   ;;  %v732_v30 = vld [vmem:[%s2096_s2] sm:$0xff] }
  0x3a   :  { %316 = vmatpush.xpose.msra.mxu0 %v101_v29  ;;  %1201 = vmatpush.xpose.msra.mxu2 %v101_v29  ;;  %v95_v29 = vld [vmem:[%s2094_s25 + $0xf0] sm:$0xff] }
  0x3d   :  { %287 = vperm.xlu1 %1240, %v141_v31   ;;  %292 = vperm.xlu0 %1239, %v142_v32   ;;  %v733_v31 = vld [vmem:[%s2096_s2 + $0x8] sm:$0xff]  ;;  %v836_v32 = vld [vmem:[%s2066_s8 + $0x18] sm:$0xff] }
  0x3e   :  { %317 = vmatpush.xpose.msra.mxu0 %v100_v33  ;;  %1202 = vmatpush.xpose.msra.mxu2 %v100_v33 }
  0x3f   :  { %282 = vperm.xlu2 %1241, %v140_v35   ;;  %v96_v35 = vld [vmem:[%s2094_s25 + $0xf8] sm:$0xff] }
  0x42   :  { %318 = vmatpush.xpose.msra.mxu0 %v99_v34  ;;  %1203 = vmatpush.xpose.msra.mxu2 %v99_v34  ;;  %v76_v34 = vld [vmem:[%s2094_s25 + $0x58] sm:$0xff] }
  0x45   :  { %272 = vperm.xlu1 %1240, %v138_v36   ;;  %277 = vperm.xlu0 %1239, %v139_v37   ;;  %v834_v36 = vld [vmem:[%s2066_s8 + $0x8] sm:$0xff]  ;;  %v835_v37 = vld [vmem:[%s2066_s8 + $0x10] sm:$0xff] }
  0x46   :  { %319 = vmatpush.xpose.msra.mxu0 %v98_v38  ;;  %1204 = vmatpush.xpose.msra.mxu2 %v98_v38  ;;  %v833_v38 = vld [vmem:[%s2066_s8] sm:$0xff] }
  0x47   :  { %267 = vperm.xlu2 %1241, %v137_v40   ;;  %v77_v40 = vld [vmem:[%s2094_s25 + $0x60] sm:$0xff] }
  0x4a   :  { %320 = vmatpush.xpose.msra.mxu0 %v97_v39  ;;  %1205 = vmatpush.xpose.msra.mxu2 %v97_v39 }
  0x4d   :  { %321 = vmatmul.f32.vlgmr.msra.gmra.mxu0 %v65_v41  ;;  %381 = vmatmul.f32.vlgmr.msra.gmra.mxu2 %v85_v42  ;;  %v905_v41 = vld [vmem:[%s2067_s10] sm:$0xff]  ;;  %v906_v42 = vld [vmem:[%s2067_s10 + $0x8] sm:$0xff] }
  0x4e   :  { %257 = vperm.xlu1 %1240, %v135_v43   ;;  %262 = vperm.xlu0 %1239, %v136_v44   ;;  %v956_v44 = vld [vmem:[%s2068_s12 + $0x18] sm:$0xff] }
  0x4f   :  { %252 = vperm.xlu2 %1241, %v134_v45  }
  0x55   :  { %324 = vmatmul.f32.gmra.mxu0 %v66_v46  ;;  %384 = vmatmul.f32.gmra.mxu2 %v86_v47  ;;  %v78_v46 = vld [vmem:[%s2094_s25 + $0x68] sm:$0xff] }
  0x56   :  { %242 = vperm.xlu1 %1240, %v132_v48   ;;  %247 = vperm.xlu0 %1239, %v133_v49   ;;  %v954_v47 = vld [vmem:[%s2068_s12 + $0x8] sm:$0xff]  ;;  %v955_v48 = vld [vmem:[%s2068_s12 + $0x10] sm:$0xff] }
  0x57   :  { %237 = vperm.xlu2 %1241, %v131_v50  }
  0x5d   :  { %327 = vmatmul.f32.gmra.mxu0 %v67_v51  ;;  %387 = vmatmul.f32.gmra.mxu2 %v87_v52  ;;  %v953_v51 = vld [vmem:[%s2068_s12] sm:$0xff]  ;;  %v79_v52 = vld [vmem:[%s2094_s25 + $0x70] sm:$0xff] }
  0x5e   :  { %227 = vperm.xlu1 %1240, %v129_v53   ;;  %232 = vperm.xlu0 %1239, %v130_v54   ;;  %v1029_v53 = vld [vmem:[%s2069_s14 + $0x10] sm:$0xff]  ;;  %v1030_v54 = vld [vmem:[%s2069_s14 + $0x18] sm:$0xff] }
  0x5f   :  { %575 = vperm.xlu2 %1241, %v497_v55  }
  0x65   :  { %330 = vmatmul.f32.gmra.mxu0 %v68_v56  ;;  %390 = vmatmul.f32.gmra.mxu2 %v88_v57 }
  0x66   :  { %565 = vperm.xlu1 %1240, %v495_v58   ;;  %570 = vperm.xlu0 %1239, %v496_v59   ;;  %v1028_v58 = vld [vmem:[%s2069_s14 + $0x8] sm:$0xff]  ;;  %v80_v59 = vld [vmem:[%s2094_s25 + $0x78] sm:$0xff] }
  0x67   :  { %560 = vperm.xlu2 %1241, %v494_v60   ;;  %v1098_v60 = vld [vmem:[%s2070_s16] sm:$0xff] }
  0x69   :  { %v1652_v39 = vpop.permute.xlu2 %202 }
  0x6d   :  { %333 = vmatmul.f32.gmra.mxu0 %v69_v61  ;;  %393 = vmatmul.f32.gmra.mxu2 %v89_v62  ;;  %v1027_v61 = vld [vmem:[%s2069_s14] sm:$0xff] }
  0x6e   :  { %550 = vperm.xlu1 %1240, %v492_v63   ;;  %555 = vperm.xlu0 %1239, %v493_v0   ;;  %v1099_v0 = vld [vmem:[%s2070_s16 + $0x8] sm:$0xff] }
  0x6f   :  { %545 = vperm.xlu2 %1241, %v491_v1  }
  0x71   :  { %v1679_v49 = vpop.permute.xlu2 %197 }
  0x75   :  { %336 = vmatmul.f32.gmra.mxu0 %v70_v2  ;;  %396 = vmatmul.f32.gmra.mxu2 %v90_v3  ;;  %v81_v3 = vld [vmem:[%s2094_s25 + $0x80] sm:$0xff] }
  0x76   :  { %535 = vperm.xlu1 %1240, %v489_v4   ;;  %540 = vperm.xlu0 %1239, %v490_v5   ;;  %v1142_v5 = vld [vmem:[%s2071_s17 + $0x8] sm:$0xff] }
  0x77   :  { %530 = vperm.xlu2 %1241, %v488_v6   ;;  %v1141_v6 = vld [vmem:[%s2071_s17] sm:$0xff] }
  0x79   :  { %v183_v56 = vpop.permute.xlu2 %182 }
  0x7d   :  { %339 = vmatmul.f32.gmra.mxu0 %v71_v7  ;;  %399 = vmatmul.f32.gmra.mxu2 %v91_v8 }
  0x7e   :  { %520 = vperm.xlu1 %1240, %v486_v9   ;;  %525 = vperm.xlu0 %1239, %v487_v10  }
  0x7f   :  { %515 = vperm.xlu2 %1241, %v485_v11   ;;  %v1615_v26 = vpop.permute.xlu0 %222  ;;  %v1668_v45 = vpop.permute.xlu1 %212  ;;  %v82_v11 = vld [vmem:[%s2094_s25 + $0x88] sm:$0xff] }
  0x81   :  { %v168_v63 = vpop.permute.xlu2 %167 }
  0x85   :  { %342 = vmatmul.f32.gmra.mxu0 %v72_v12  ;;  %402 = vmatmul.f32.gmra.mxu2 %v92_v13 }
  0x86   :  { %505 = vperm.xlu1 %1240, %v483_v14   ;;  %510 = vperm.xlu0 %1239, %v484_v15  }
  0x87   :  { %500 = vperm.xlu2 %1241, %v482_v16   ;;  %v1635_v33 = vpop.permute.xlu0 %217  ;;  %v1695_v55 = vpop.permute.xlu1 %207  ;;  %v83_v16 = vld [vmem:[%s2094_s25 + $0x90] sm:$0xff] }
  0x89   :  { %v153_v9 = vpop.permute.xlu2 %152 }
  0x8d   :  { %345 = vmatmul.f32.gmra.mxu0 %v73_v17  ;;  %405 = vmatmul.f32.gmra.mxu2 %v93_v18 }
  0x8e   :  { %772 = vperm.xlu1 %1240, %v738_v19   ;;  %777 = vperm.xlu0 %1239, %v739_v20   ;;  %v84_v20 = vld [vmem:[%s2094_s25 + $0x98] sm:$0xff] }
  0x8f   :  { %767 = vperm.xlu2 %1241, %v737_v21   ;;  %v1663_v43 = vpop.permute.xlu0 %192  ;;  %v188_v62 = vpop.permute.xlu1 %187 }
  0x95   :  { %348 = vmatmul.f32.gmra.mxu0 %v74_v22  ;;  %408 = vmatmul.f32.gmra.mxu2 %v94_v23 }
  0x96   :  { %757 = vperm.xlu1 %1240, %v735_v24   ;;  %762 = vperm.xlu0 %1239, %v736_v25  }
  0x97   :  { %752 = vperm.xlu2 %1241, %v734_v27   ;;  %v1681_v50 = vpop.permute.xlu0 %177  ;;  %v173_v7 = vpop.permute.xlu1 %172 }
  0x9d   :  { %351 = vmatmul.f32.gmra.mxu0 %v75_v28  ;;  %411 = vmatmul.f32.gmra.mxu2 %v95_v29 }
  0x9e   :  { %742 = vperm.xlu1 %1240, %v732_v30   ;;  %747 = vperm.xlu0 %1239, %v733_v31  }
  0x9f   :  { %854 = vperm.xlu2 %1241, %v836_v32   ;;  %v163_v57 = vpop.permute.xlu0 %162  ;;  %v158_v14 = vpop.permute.xlu1 %157 }
  0xa5   :  { %354 = vmatmul.f32.gmra.mxu0 %v76_v34  ;;  %414 = vmatmul.f32.gmra.mxu2 %v96_v35 }
  0xa6   :  { %844 = vperm.xlu1 %1240, %v834_v36   ;;  %849 = vperm.xlu0 %1239, %v835_v37  }
  0xa7   :  { %839 = vperm.xlu2 %1241, %v833_v38   ;;  %v148_v1 = vpop.permute.xlu0 %147 }
  0xad   :  { %357 = vmatmul.f32.gmra.mxu0 %v77_v40 }
  0xae   :  { %909 = vperm.xlu1 %1240, %v905_v41   ;;  %914 = vperm.xlu0 %1239, %v906_v42   ;;  %v303_v42 = vpop.permute.xlu1 %302 }
  0xaf   :  { %974 = vperm.xlu2 %1241, %v956_v44  }
  0xb5   :  { %360 = vmatmul.f32.gmra.mxu0 %v78_v46 }
  0xb6   :  { %964 = vperm.xlu1 %1240, %v954_v47   ;;  %969 = vperm.xlu0 %1239, %v955_v48   ;;  %v298_v47 = vpop.permute.xlu2 %297  ;;  %v293_v48 = vpop.permute.xlu0 %292 }
  0xb7   :  { %959 = vperm.xlu2 %1241, %v953_v51  }
  0xbd   :  { %363 = vmatmul.f32.gmra.mxu0 %v79_v52  ;;  %v288_v52 = vpop.permute.xlu1 %287 }
  0xbe   :  { %1043 = vperm.xlu1 %1240, %v1029_v53   ;;  %1048 = vperm.xlu0 %1239, %v1030_v54   ;;  %v283_v53 = vpop.permute.xlu2 %282 }
  0xbf   :  { %1038 = vperm.xlu2 %1241, %v1028_v58  }
  0xc5   :  { %366 = vmatmul.f32.gmra.mxu0 %v80_v59 }
  0xc6   :  { %1102 = vperm.xlu1 %1240, %v1098_v60   ;;  %1033 = vperm.xlu0 %1239, %v1027_v61  }
  0xc7   :  { %1107 = vperm.xlu2 %1241, %v1099_v0   ;;  %v273_v0 = vpop.permute.xlu1 %272 }
  0xca   :  { %v322_v2 = vpop.f32.mrf.mxu0 }
  0xcb   :  { %v1715_v4 = vadd.f32 %v322_v2, %v148_v1 }
  0xcd   :  { %369 = vmatmul.f32.gmra.mxu0 %v81_v3  ;;  %v268_v3 = vpop.permute.xlu2 %267 }
  0xce   :  { %1150 = vperm.xlu1 %1240, %v1142_v5   ;;  %1145 = vperm.xlu0 %1239, %v1141_v6  }
  0xd0   :  { %v1723_v8 = vpop.f32.mrf.mxu2 }
  0xd2   :  { %v325_v10 = vpop.f32.mrf.mxu0 }
  0xd3   :  { %v1728_v12 = vadd.f32 %v325_v10, %v153_v9 }
  0xd5   :  { %372 = vmatmul.f32.gmra.mxu0 %v82_v11 }
  0xd8   :  { %v1730_v13 = vpop.f32.mrf.mxu2 }
  0xda   :  { %v328_v15 = vpop.f32.mrf.mxu0 }
  0xdb   :  { %v1735_v17 = vadd.f32 %v328_v15, %v158_v14 }
  0xdd   :  { %375 = vmatmul.f32.gmra.mxu0 %v83_v16 }
  0xe0   :  { %v1737_v18 = vpop.f32.mrf.mxu2 }
  0xe2   :  { %v331_v19 = vpop.f32.mrf.mxu0 }
  0xe3   :  { %v1742_v21 = vadd.f32 %v331_v19, %v163_v57 }
  0xe5   :  { %378 = vmatmul.f32.gmra.mxu0 %v84_v20  ;;  %v258_v20 = vpop.permute.xlu1 %257 }
  0xe8   :  { %v391_v22 = vpop.f32.mrf.mxu2 }
  0xea   :  { %v334_v23 = vpop.f32.mrf.mxu0 }
  0xeb   :  { %v1744_v24 = vadd.f32 %v334_v23, %v168_v63  ;;  %v389_v23 = vadd.f32 %v1737_v18, %v258_v20  ;;  %v462_v20 = vld [vmem:[%s2072_s3 + $0x60] sm:$0xff] }
  0xf0   :  { %v394_v25 = vpop.f32.mrf.mxu2 }
  0xf1   :  { %v395_v14 = vadd.f32 %v394_v25, %v268_v3  ;;  %v253_v25 = vpop.permute.xlu2 %252 }
  0xf2   :  { %v337_v27 = vpop.f32.mrf.mxu0 }
  0xf3   :  { %v1746_v28 = vadd.f32 %v337_v27, %v173_v7  ;;  %v1786_v27 = vmax.f32 %v395_v14, 0.0  ;;  %v465_v14 = vld [vmem:[%s2072_s3 + $0x78] sm:$0xff] }
  0xf8   :  { %v397_v29 = vpop.f32.mrf.mxu2 }
  0xf9   :  { %v398_v7 = vadd.f32 %v397_v29, %v273_v0  ;;  %v386_v29 = vadd.f32 %v1730_v13, %v253_v25  ;;  %v464_v25 = vld [vmem:[%s2072_s3 + $0x70] sm:$0xff] }
  0xfa   :  { %v340_v30 = vpop.f32.mrf.mxu0 }
  0xfb   :  { %v1749_v31 = vadd.f32 %v340_v30, %v1681_v50  ;;  %v1781_v19 = vmax.f32 %v398_v7, 0.0 }
 0x100   :  { %v400_v32 = vpop.f32.mrf.mxu2 }
 0x102   :  { %v343_v34 = vpop.f32.mrf.mxu0 }
 0x103   :  { %v1751_v35 = vadd.f32 %v343_v34, %v183_v56  ;;  %v278_v56 = vpop.permute.xlu0 %277 }
 0x104   :  { %v401_v5 = vadd.f32 %v400_v32, %v278_v56  ;;  %v1795_v32 = vmax.f32 %v389_v23, 0.0  ;;  %v469_v23 = vld [vmem:[%s2072_s3 + $0x98] sm:$0xff] }
 0x106   :  { %v1777_v15 = vmax.f32 %v401_v5, 0.0 }
 0x108   :  { %v403_v36 = vpop.f32.mrf.mxu2 }
 0x109   :  { %v404_v1 = vadd.f32 %v403_v36, %v283_v53  ;;  %v1800_v36 = vmax.f32 %v386_v29, 0.0  ;;  %v475_v29 = vld [vmem:[%s2072_s3 + $0xc8] sm:$0xff] }
 0x10a   :  { %v346_v37 = vpop.f32.mrf.mxu0 }
 0x10b   :  { %v1753_v38 = vadd.f32 %v346_v37, %v188_v62  ;;  %v1773_v9 = vmax.f32 %v404_v1, 0.0  ;;  %v263_v11 = vpop.permute.xlu0 %262 }
 0x10c   :  { %v392_v16 = vadd.f32 %v391_v22, %v263_v11  ;;  %v458_v11 = vld [vmem:[%s2072_s3 + $0x40] sm:$0xff] }
 0x10e   :  { %v1791_v30 = vmax.f32 %v392_v16, 0.0  ;;  %v467_v16 = vld [vmem:[%s2072_s3 + $0x88] sm:$0xff] }
 0x110   :  { %v406_v40 = vpop.f32.mrf.mxu2 }
 0x111   :  { %v407_v61 = vadd.f32 %v406_v40, %v288_v52 }
 0x112   :  { %v1755_v41 = vpop.f32.mrf.mxu0 }
 0x113   :  { %v1769_v6 = vmax.f32 %v407_v61, 0.0  ;;  %v248_v18 = vpop.permute.xlu0 %247  ;;  %v418_v61 = vmax.f32 %v1715_v4, 0.0 }
 0x114   :  { %v383_v34 = vadd.f32 %v1723_v8, %v248_v18  ;;  %v479_v18 = vld [vmem:[%s2072_s3 + $0xe8] sm:$0xff] }
 0x116   :  { %v1806_v13 = vmax.f32 %v383_v34, 0.0  ;;  %v470_v34 = vld [vmem:[%s2072_s3 + $0xa0] sm:$0xff] }
 0x118   :  { %v409_v44 = vpop.f32.mrf.mxu2 }
 0x119   :  { %v410_v58 = vadd.f32 %v409_v44, %v293_v48 }
 0x11a   :  { %v1757_v46 = vpop.f32.mrf.mxu0 }
 0x11b   :  { %v1765_v2 = vmax.f32 %v410_v58, 0.0  ;;  %v243_v58 = vpop.permute.xlu1 %242  ;;  %v233_v1 = vpop.permute.xlu0 %232 }
 0x120   :  { %v412_v51 = vpop.f32.mrf.mxu2 }
 0x121   :  { %v413_v54 = vadd.f32 %v412_v51, %v298_v47 }
 0x122   :  { %v1759_v50 = vpop.f32.mrf.mxu0 }
 0x123   :  { %v1761_v62 = vmax.f32 %v413_v54, 0.0  ;;  %v356_v51 = vadd.f32 %v1759_v50, %v1652_v39  ;;  %v350_v54 = vadd.f32 %v1755_v41, %v1663_v43  ;;  %v426_v39 = vmax.f32 %v1753_v38, 0.0 }
 0x124   :  { %v425_v50 = vmax.f32 %v1751_v35, 0.0  ;;  %v422_v41 = vmax.f32 %v1744_v24, 0.0  ;;  %v420_v38 = vmax.f32 %v1735_v17, 0.0  ;;  %v419_v35 = vmax.f32 %v1728_v12, 0.0  ;;  %v450_v24 = vld [vmem:[%s2072_s3] sm:$0xff]  ;;  %v228_v17 = vpop.permute.xlu1 %227 }
 0x128   :  { %v415_v57 = vpop.f32.mrf.mxu2 }
 0x129   :  { %v416_v59 = vadd.f32 %v415_v57, %v303_v42 }
 0x12a   :  { %v358_v60 = vpop.f32.mrf.mxu0 }
 0x12b   :  { %v1763_v63 = vmax.f32 %v416_v59, 0.0  ;;  %v359_v47 = vadd.f32 %v358_v60, %v1695_v55  ;;  %v427_v55 = vmax.f32 %v350_v54, 0.0  ;;  %v421_v59 = vmax.f32 %v1742_v21, 0.0  ;;  %v238_v60 = vpop.permute.xlu2 %237 }
 0x12d   :  { %1206 = vmatpush.msrb.mxu2 %v1763_v63  ;;  %1207 = vmatpush.msra.mxu3 %v1763_v63 }
 0x12f   :  { %1208 = vmatpush.msrb.mxu2 %v1761_v62  ;;  %1209 = vmatpush.msra.mxu3 %v1761_v62 }
 0x131   :  { %1210 = vmatpush.msrb.mxu2 %v1765_v2  ;;  %1211 = vmatpush.msra.mxu3 %v1765_v2 }
 0x132   :  { %v361_v10 = vpop.f32.mrf.mxu0 }
 0x133   :  { %1212 = vmatpush.msrb.mxu2 %v1769_v6  ;;  %1213 = vmatpush.msra.mxu3 %v1769_v6  ;;  %v362_v42 = vadd.f32 %v361_v10, %v1668_v45  ;;  %v429_v45 = vmax.f32 %v356_v51, 0.0  ;;  %v452_v10 = vld [vmem:[%s2072_s3 + $0x10] sm:$0xff]  ;;  %v453_v51 = vld [vmem:[%s2072_s3 + $0x18] sm:$0xff] }
 0x135   :  { %1214 = vmatpush.msrb.mxu2 %v1773_v9  ;;  %1215 = vmatpush.msra.mxu3 %v1773_v9  ;;  %v431_v52 = vmax.f32 %v362_v42, 0.0  ;;  %v480_v42 = vld [vmem:[%s2072_s3 + $0xf0] sm:$0xff] }
 0x137   :  { %1216 = vmatpush.msrb.mxu2 %v1777_v15  ;;  %1217 = vmatpush.msra.mxu3 %v1777_v15 }
 0x139   :  { %1218 = vmatpush.msrb.mxu2 %v1781_v19  ;;  %1219 = vmatpush.msra.mxu3 %v1781_v19 }
 0x13a   :  { %v364_v22 = vpop.f32.mrf.mxu0 }
 0x13b   :  { %1220 = vmatpush.msrb.mxu2 %v1786_v27  ;;  %1221 = vmatpush.msra.mxu3 %v1786_v27  ;;  %v365_v40 = vadd.f32 %v364_v22, %v1635_v33  ;;  %v430_v33 = vmax.f32 %v359_v47, 0.0  ;;  %v477_v22 = vld [vmem:[%s2072_s3 + $0xd8] sm:$0xff]  ;;  %v451_v47 = vld [vmem:[%s2072_s3 + $0x8] sm:$0xff] }
 0x13d   :  { %1222 = vmatpush.msrb.mxu2 %v1791_v30  ;;  %1223 = vmatpush.msra.mxu3 %v1791_v30  ;;  %v432_v48 = vmax.f32 %v365_v40, 0.0  ;;  %v476_v40 = vld [vmem:[%s2072_s3 + $0xd0] sm:$0xff] }
 0x13f   :  { %1224 = vmatpush.msrb.mxu2 %v1795_v32  ;;  %1225 = vmatpush.msra.mxu3 %v1795_v32 }
 0x141   :  { %1226 = vmatpush.msrb.mxu2 %v1800_v36  ;;  %1227 = vmatpush.msra.mxu3 %v1800_v36 }
 0x142   :  { %v367_v37 = vpop.f32.mrf.mxu0 }
 0x143   :  { %v368_v8 = vadd.f32 %v367_v37, %v1615_v26  ;;  %1228 = vmatpush.msrb.mxu2 %v1806_v13  ;;  %1229 = vmatpush.msra.mxu3 %v1806_v13  ;;  %v353_v26 = vadd.f32 %v1757_v46, %v1679_v49  ;;  %v424_v49 = vmax.f32 %v1749_v31, 0.0  ;;  %v423_v46 = vmax.f32 %v1746_v28, 0.0  ;;  %v474_v37 = vld [vmem:[%s2072_s3 + $0xc0] sm:$0xff] }
 0x145   :  { %v433_v44 = vmax.f32 %v368_v8, 0.0  ;;  %v428_v56 = vmax.f32 %v353_v26, 0.0  ;;  %v478_v8 = vld [vmem:[%s2072_s3 + $0xe0] sm:$0xff] }
 0x147   :  { %578 = vmatpush.msra.mxu1 %v433_v44 }
 0x149   :  { %579 = vmatpush.msra.mxu1 %v432_v48 }
 0x14a   :  { %v370_v53 = vpop.f32.mrf.mxu0 }
 0x14b   :  { %580 = vmatpush.msra.mxu1 %v431_v52  ;;  %v371_v5 = vadd.f32 %v370_v53, %v228_v17  ;;  %v455_v53 = vld [vmem:[%s2072_s3 + $0x28] sm:$0xff] }
 0x14d   :  { %581 = vmatpush.msra.mxu1 %v430_v33  ;;  %v434_v7 = vmax.f32 %v371_v5, 0.0  ;;  %v457_v33 = vld [vmem:[%s2072_s3 + $0x38] sm:$0xff] }
 0x14f   :  { %582 = vmatpush.msra.mxu1 %v429_v45 }
 0x151   :  { %583 = vmatpush.msra.mxu1 %v428_v56 }
 0x152   :  { %v373_v57 = vpop.f32.mrf.mxu0 }
 0x153   :  { %584 = vmatpush.msra.mxu1 %v427_v55  ;;  %v374_v21 = vadd.f32 %v373_v57, %v233_v1 }
 0x155   :  { %585 = vmatpush.msra.mxu1 %v426_v39  ;;  %v435_v4 = vmax.f32 %v374_v21, 0.0 }
 0x157   :  { %586 = vmatpush.msra.mxu1 %v425_v50 }
 0x159   :  { %587 = vmatpush.msra.mxu1 %v424_v49 }
 0x15a   :  { %v376_v43 = vpop.f32.mrf.mxu0 }
 0x15b   :  { %588 = vmatpush.msra.mxu1 %v423_v46  ;;  %v377_v28 = vadd.f32 %v376_v43, %v238_v60 }
 0x15d   :  { %589 = vmatpush.msra.mxu1 %v422_v41  ;;  %v436_v12 = vmax.f32 %v377_v28, 0.0  ;;  %v571_v28 = vpop.permute.xlu0 %570 }
 0x15f   :  { %590 = vmatpush.msra.mxu1 %v421_v59 }
 0x161   :  { %591 = vmatpush.msra.mxu1 %v420_v38 }
 0x162   :  { %v379_v31 = vpop.f32.mrf.mxu0 }
 0x163   :  { %v380_v0 = vadd.f32 %v379_v31, %v243_v58  ;;  %592 = vmatpush.msra.mxu1 %v419_v35  ;;  %v576_v31 = vpop.permute.xlu2 %575 }
 0x165   :  { %v437_v3 = vmax.f32 %v380_v0, 0.0  ;;  %593 = vmatpush.msra.mxu1 %v418_v61  ;;  %v566_v0 = vpop.permute.xlu1 %565  ;;  %v556_v17 = vpop.permute.xlu0 %555 }
 0x166   :  { %594 = vmatmul.f32.vlgmr.msra.gmra.mxu1 %v450_v24 }
 0x167   :  { %643 = vmatpush.msrb.mxu1 %v1763_v63  ;;  %1230 = vmatpush.msrb.mxu2 %v437_v3  ;;  %v459_v63 = vld [vmem:[%s2072_s3 + $0x48] sm:$0xff] }
 0x168   :  { %1231 = vmatpush.msra.mxu3 %v437_v3 }
 0x169   :  { %644 = vmatpush.msrb.mxu1 %v1761_v62  ;;  %1232 = vmatpush.msrb.mxu2 %v436_v12  ;;  %v454_v62 = vld [vmem:[%s2072_s3 + $0x20] sm:$0xff] }
 0x16a   :  { %1233 = vmatpush.msra.mxu3 %v436_v12 }
 0x16b   :  { %645 = vmatpush.msrb.mxu1 %v1765_v2  ;;  %1234 = vmatpush.msrb.mxu2 %v435_v4  ;;  %v461_v2 = vld [vmem:[%s2072_s3 + $0x58] sm:$0xff] }
 0x16c   :  { %1235 = vmatpush.msra.mxu3 %v435_v4 }
 0x16d   :  { %646 = vmatpush.msrb.mxu1 %v1769_v6  ;;  %1236 = vmatpush.msrb.mxu2 %v434_v7  ;;  %v456_v6 = vld [vmem:[%s2072_s3 + $0x30] sm:$0xff]  ;;  %v551_v5 = vpop.permute.xlu1 %550 }
 0x16e   :  { %1237 = vmatpush.msra.mxu3 %v434_v7  ;;  %597 = vmatmul.f32.gmra.mxu1 %v452_v10 }
 0x16f   :  { %647 = vmatpush.msrb.mxu1 %v1773_v9  ;;  %671 = vmatmul.f32.vlgmr.msrb.gmra.mxu2 %v459_v63  ;;  %v463_v9 = vld [vmem:[%s2072_s3 + $0x68] sm:$0xff] }
 0x171   :  { %648 = vmatpush.msrb.mxu1 %v1777_v15  ;;  %v460_v15 = vld [vmem:[%s2072_s3 + $0x50] sm:$0xff] }
 0x173   :  { %649 = vmatpush.msrb.mxu1 %v1781_v19  ;;  %v471_v19 = vld [vmem:[%s2072_s3 + $0xa8] sm:$0xff] }
 0x174   :  { %689 = vmatmul.f32.vlgmr.msra.gmra.mxu3 %v471_v19  ;;  %v541_v19 = vpop.permute.xlu0 %540 }
 0x175   :  { %650 = vmatpush.msrb.mxu1 %v1786_v27  ;;  %v473_v27 = vld [vmem:[%s2072_s3 + $0xb8] sm:$0xff] }
 0x176   :  { %600 = vmatmul.f32.gmra.mxu1 %v454_v62 }
 0x177   :  { %651 = vmatpush.msrb.mxu1 %v1791_v30  ;;  %674 = vmatmul.f32.gmra.mxu2 %v461_v2  ;;  %v466_v30 = vld [vmem:[%s2072_s3 + $0x80] sm:$0xff] }
 0x179   :  { %652 = vmatpush.msrb.mxu1 %v1795_v32  ;;  %v468_v32 = vld [vmem:[%s2072_s3 + $0x90] sm:$0xff] }
 0x17b   :  { %653 = vmatpush.msrb.mxu1 %v1800_v36  ;;  %v481_v36 = vld [vmem:[%s2072_s3 + $0xf8] sm:$0xff] }
 0x17c   :  { %692 = vmatmul.f32.gmra.mxu3 %v473_v27 }
 0x17d   :  { %654 = vmatpush.msrb.mxu1 %v1806_v13  ;;  %v472_v13 = vld [vmem:[%s2072_s3 + $0xb0] sm:$0xff] }
 0x17e   :  { %603 = vmatmul.f32.gmra.mxu1 %v456_v6 }
 0x17f   :  { %655 = vmatpush.msrb.mxu1 %v437_v3  ;;  %677 = vmatmul.f32.gmra.mxu2 %v463_v9  ;;  %v561_v3 = vpop.permute.xlu2 %560 }
 0x181   :  { %656 = vmatpush.msrb.mxu1 %v436_v12 }
 0x183   :  { %657 = vmatpush.msrb.mxu1 %v435_v4 }
 0x184   :  { %695 = vmatmul.f32.gmra.mxu3 %v475_v29 }
 0x185   :  { %658 = vmatpush.msrb.mxu1 %v434_v7 }
 0x186   :  { %606 = vmatmul.f32.gmra.mxu1 %v458_v11 }
 0x187   :  { %680 = vmatmul.f32.gmra.mxu2 %v465_v14  ;;  %v546_v11 = vpop.permute.xlu2 %545 }
 0x18c   :  { %698 = vmatmul.f32.gmra.mxu3 %v477_v22 }
 0x18e   :  { %609 = vmatmul.f32.gmra.mxu1 %v460_v15 }
 0x18f   :  { %683 = vmatmul.f32.gmra.mxu2 %v467_v16 }
 0x194   :  { %701 = vmatmul.f32.gmra.mxu3 %v479_v18 }
 0x196   :  { %612 = vmatmul.f32.gmra.mxu1 %v462_v20 }
 0x197   :  { %686 = vmatmul.f32.gmra.mxu2 %v469_v23 }
 0x19c   :  { %704 = vmatmul.f32.gmra.mxu3 %v481_v36 }
 0x19e   :  { %615 = vmatmul.f32.gmra.mxu1 %v464_v25  ;;  %v536_v25 = vpop.permute.xlu1 %535 }
 0x1a6   :  { %618 = vmatmul.f32.gmra.mxu1 %v466_v30 }
 0x1ae   :  { %621 = vmatmul.f32.gmra.mxu1 %v468_v32 }
 0x1b6   :  { %624 = vmatmul.f32.gmra.mxu1 %v470_v34 }
 0x1be   :  { %627 = vmatmul.f32.gmra.mxu1 %v472_v13 }
 0x1c6   :  { %630 = vmatmul.f32.gmra.mxu1 %v474_v37 }
 0x1ce   :  { %633 = vmatmul.f32.gmra.mxu1 %v476_v40 }
 0x1d6   :  { %636 = vmatmul.f32.gmra.mxu1 %v478_v8 }
 0x1de   :  { %639 = vmatmul.f32.gmra.mxu1 %v480_v42  ;;  %v531_v42 = vpop.permute.xlu2 %530 }
 0x1e3   :  { %v1927_v44 = vpop.f32.mrf.mxu1 }
 0x1e6   :  { %659 = vmatmul.f32.vlgmr.msrb.gmra.mxu1 %v451_v47 }
 0x1eb   :  { %v1932_v48 = vpop.f32.mrf.mxu1 }
 0x1ee   :  { %662 = vmatmul.f32.gmra.mxu1 %v453_v51 }
 0x1f2   :  { %v1951_v49 = vpop.f32.mrf.mxu2 }
 0x1f3   :  { %v1937_v52 = vpop.f32.mrf.mxu1 }
 0x1f6   :  { %665 = vmatmul.f32.gmra.mxu1 %v455_v53 }
 0x1f7   :  { %v690_v39 = vpop.f32.mrf.mxu3 }
 0x1fa   :  { %v1953_v58 = vpop.f32.mrf.mxu2 }
 0x1fb   :  { %v1942_v26 = vpop.f32.mrf.mxu1 }
 0x1fe   :  { %668 = vmatmul.f32.gmra.mxu1 %v457_v33  ;;  %v526_v33 = vpop.permute.xlu0 %525 }
 0x1ff   :  { %v693_v43 = vpop.f32.mrf.mxu3 }
 0x202   :  { %v678_v35 = vpop.f32.mrf.mxu2 }
 0x203   :  { %v1947_v54 = vpop.f32.mrf.mxu1 }
 0x207   :  { %v696_v59 = vpop.f32.mrf.mxu3 }
 0x20a   :  { %v681_v24 = vpop.f32.mrf.mxu2 }
 0x20b   :  { %v1949_v45 = vpop.f32.mrf.mxu1 }
 0x20f   :  { %v699_v60 = vpop.f32.mrf.mxu3 }
 0x212   :  { %v684_v12 = vpop.f32.mrf.mxu2 }
 0x213   :  { %v613_v56 = vpop.f32.mrf.mxu1 }
 0x214   :  { %v614_v47 = vadd.f32 %v613_v56, %v531_v42 }
 0x217   :  { %v702_v1 = vpop.f32.mrf.mxu3 }
 0x21a   :  { %v687_v18 = vpop.f32.mrf.mxu2 }
 0x21b   :  { %v616_v55 = vpop.f32.mrf.mxu1 }
 0x21c   :  { %v617_v37 = vadd.f32 %v616_v55, %v536_v25 }
 0x21f   :  { %v705_v10 = vpop.f32.mrf.mxu3 }
 0x223   :  { %v619_v57 = vpop.f32.mrf.mxu1 }
 0x224   :  { %v620_v34 = vadd.f32 %v619_v57, %v541_v19  ;;  %v521_v57 = vpop.permute.xlu1 %520 }
 0x226   :  { %v685_v51 = vadd.f32 %v684_v12, %v620_v34 }
 0x228   :  { %v716_v55 = vmax.f32 %v685_v51, 0.0 }
 0x22b   :  { %v622_v50 = vpop.f32.mrf.mxu1 }
 0x22c   :  { %v623_v30 = vadd.f32 %v622_v50, %v546_v11  ;;  %v611_v50 = vadd.f32 %v1949_v45, %v526_v33  ;;  %v731_v11 = vld [vmem:[%s2073_s5 + $0x38] sm:$0xff] }
 0x22e   :  { %v688_v40 = vadd.f32 %v687_v18, %v623_v30 }
 0x233   :  { %v625_v46 = vpop.f32.mrf.mxu1 }
 0x234   :  { %v626_v20 = vadd.f32 %v625_v46, %v551_v5 }
 0x236   :  { %v691_v36 = vadd.f32 %v690_v39, %v626_v20  ;;  %v608_v39 = vadd.f32 %v1947_v54, %v521_v57 }
 0x238   :  { %v718_v53 = vmax.f32 %v691_v36, 0.0  ;;  %v673_v56 = vadd.f32 %v1951_v49, %v608_v39 }
 0x23b   :  { %v628_v41 = vpop.f32.mrf.mxu1 }
 0x23c   :  { %v629_v14 = vadd.f32 %v628_v41, %v556_v17  ;;  %v717_v41 = vmax.f32 %v688_v40, 0.0 }
 0x23e   :  { %v694_v22 = vadd.f32 %v693_v43, %v629_v14  ;;  %v682_v43 = vadd.f32 %v681_v24, %v617_v37  ;;  %v511_v24 = vpop.permute.xlu0 %510 }
 0x23f   :  { %v602_v54 = vadd.f32 %v1937_v52, %v511_v24  ;;  %v724_v52 = vld [vmem:[%s2073_s5] sm:$0xff] }
 0x240   :  { %v719_v8 = vmax.f32 %v694_v22, 0.0 }
 0x243   :  { %v631_v38 = vpop.f32.mrf.mxu1 }
 0x244   :  { %v632_v2 = vadd.f32 %v631_v38, %v561_v3  ;;  %v676_v38 = vadd.f32 %v1953_v58, %v611_v50 }
 0x246   :  { %v697_v23 = vadd.f32 %v696_v59, %v632_v2  ;;  %v679_v59 = vadd.f32 %v678_v35, %v614_v47  ;;  %v713_v45 = vmax.f32 %v676_v38, 0.0  ;;  %v728_v2 = vld [vmem:[%s2073_s5 + $0x20] sm:$0xff] }
 0x247   :  { %v829_v38 = vld [vmem:[%s2074_s7] sm:$0xff] }
 0x248   :  { %v720_v13 = vmax.f32 %v697_v23, 0.0 }
 0x24b   :  { %v634_v61 = vpop.f32.mrf.mxu1 }
 0x24c   :  { %v635_v63 = vadd.f32 %v634_v61, %v566_v0  ;;  %v516_v61 = vpop.permute.xlu2 %515  ;;  %v712_v0 = vmax.f32 %v673_v56, 0.0  ;;  %v831_v56 = vld [vmem:[%s2074_s7 + $0x10] sm:$0xff] }
 0x24d   :  { %v605_v35 = vadd.f32 %v1942_v26, %v516_v61  ;;  %v727_v26 = vld [vmem:[%s2073_s5 + $0x18] sm:$0xff] }
 0x24e   :  { %v700_v15 = vadd.f32 %v699_v60, %v635_v63  ;;  %v715_v60 = vmax.f32 %v682_v43, 0.0 }
 0x250   :  { %v721_v32 = vmax.f32 %v700_v15, 0.0 }
 0x253   :  { %v637_v21 = vpop.f32.mrf.mxu1 }
 0x254   :  { %v638_v4 = vadd.f32 %v637_v21, %v571_v28  ;;  %v501_v17 = vpop.permute.xlu2 %500 }
 0x255   :  { %v596_v5 = vadd.f32 %v1927_v44, %v501_v17  ;;  %v726_v44 = vld [vmem:[%s2073_s5 + $0x10] sm:$0xff] }
 0x256   :  { %v703_v6 = vadd.f32 %v702_v1, %v638_v4  ;;  %v506_v1 = vpop.permute.xlu1 %505 }
 0x257   :  { %v599_v21 = vadd.f32 %v1932_v48, %v506_v1  ;;  %v725_v48 = vld [vmem:[%s2073_s5 + $0x8] sm:$0xff] }
 0x258   :  { %v722_v27 = vmax.f32 %v703_v6, 0.0  ;;  %v729_v6 = vld [vmem:[%s2073_s5 + $0x28] sm:$0xff] }
 0x25b   :  { %v640_v7 = vpop.f32.mrf.mxu1 }
 0x25c   :  { %v641_v62 = vadd.f32 %v640_v7, %v576_v31  ;;  %v714_v31 = vmax.f32 %v679_v59, 0.0  ;;  %v768_v30 = vpop.permute.xlu2 %767 }
 0x25e   :  { %v706_v9 = vadd.f32 %v705_v10, %v641_v62  ;;  %v773_v25 = vpop.permute.xlu1 %772 }
 0x260   :  { %v723_v16 = vmax.f32 %v706_v9, 0.0  ;;  %v730_v9 = vld [vmem:[%s2073_s5 + $0x30] sm:$0xff] }
 0x262   :  { %780 = vmatpush.msrb.mxu3 %v723_v16 }
 0x263   :  { %v660_v29 = vpop.f32.mrf.mxu1 }
 0x264   :  { %781 = vmatpush.msrb.mxu3 %v722_v27  ;;  %v661_v7 = vadd.f32 %v660_v29, %v596_v5  ;;  %v778_v27 = vpop.permute.xlu0 %777  ;;  %v753_v51 = vpop.permute.xlu2 %752 }
 0x266   :  { %782 = vmatpush.msrb.mxu3 %v721_v32  ;;  %v708_v62 = vmax.f32 %v661_v7, 0.0  ;;  %v758_v36 = vpop.permute.xlu1 %757  ;;  %v903_v7 = vld [vmem:[%s2075_s9] sm:$0xff] }
 0x268   :  { %783 = vmatpush.msrb.mxu3 %v720_v13 }
 0x26a   :  { %784 = vmatpush.msrb.mxu3 %v719_v8 }
 0x26b   :  { %v663_v46 = vpop.f32.mrf.mxu1 }
 0x26c   :  { %785 = vmatpush.msrb.mxu3 %v718_v53  ;;  %v664_v12 = vadd.f32 %v663_v46, %v599_v21  ;;  %v763_v22 = vpop.permute.xlu0 %762 }
 0x26e   :  { %786 = vmatpush.msrb.mxu3 %v717_v41  ;;  %v709_v63 = vmax.f32 %v664_v12, 0.0  ;;  %v743_v41 = vpop.permute.xlu1 %742 }
 0x270   :  { %787 = vmatpush.msrb.mxu3 %v716_v55 }
 0x272   :  { %788 = vmatpush.msrb.mxu3 %v715_v60  ;;  %v830_v60 = vld [vmem:[%s2074_s7 + $0x8] sm:$0xff] }
 0x273   :  { %v666_v28 = vpop.f32.mrf.mxu1 }
 0x274   :  { %789 = vmatpush.msrb.mxu3 %v714_v31  ;;  %v667_v3 = vadd.f32 %v666_v28, %v602_v54  ;;  %v748_v46 = vpop.permute.xlu0 %747  ;;  %v832_v31 = vld [vmem:[%s2074_s7 + $0x18] sm:$0xff] }
 0x276   :  { %790 = vmatpush.msrb.mxu3 %v713_v45  ;;  %v710_v10 = vmax.f32 %v667_v3, 0.0 }
 0x278   :  { %791 = vmatpush.msrb.mxu3 %v712_v0  ;;  %v855_v0 = vpop.permute.xlu2 %854 }
 0x27b   :  { %v669_v58 = vpop.f32.mrf.mxu1 }
 0x27c   :  { %v670_v49 = vadd.f32 %v669_v58, %v605_v35  ;;  %v850_v24 = vpop.permute.xlu0 %849  ;;  %v845_v58 = vpop.permute.xlu1 %844 }
 0x27e   :  { %v711_v4 = vmax.f32 %v670_v49, 0.0 }
 0x280   :  { %792 = vmatpush.msrb.mxu3 %v711_v4  ;;  %v840_v49 = vpop.permute.xlu2 %839 }
 0x282   :  { %793 = vmatpush.msrb.mxu3 %v710_v10  ;;  %v904_v10 = vld [vmem:[%s2075_s9 + $0x8] sm:$0xff] }
 0x284   :  { %794 = vmatpush.msrb.mxu3 %v709_v63 }
 0x286   :  { %795 = vmatpush.msrb.mxu3 %v708_v62  ;;  %v910_v62 = vpop.permute.xlu1 %909 }
 0x287   :  { %796 = vmatmul.f32.vlgmr.msrb.gmra.mxu3 %v724_v52  ;;  %v915_v52 = vpop.permute.xlu0 %914 }
 0x28f   :  { %799 = vmatmul.f32.gmra.mxu3 %v725_v48 }
 0x297   :  { %802 = vmatmul.f32.gmra.mxu3 %v726_v44 }
 0x29f   :  { %805 = vmatmul.f32.gmra.mxu3 %v727_v26 }
 0x2a7   :  { %808 = vmatmul.f32.gmra.mxu3 %v728_v2 }
 0x2af   :  { %811 = vmatmul.f32.gmra.mxu3 %v729_v6 }
 0x2b7   :  { %814 = vmatmul.f32.gmra.mxu3 %v730_v9  ;;  %v949_v9 = vld [vmem:[%s2076_s11] sm:$0xff] }
 0x2bf   :  { %817 = vmatmul.f32.gmra.mxu3 %v731_v11  ;;  %v950_v11 = vld [vmem:[%s2076_s11 + $0x8] sm:$0xff] }
 0x30a   :  { %v797_v14 = vpop.f32.mrf.mxu3 }
 0x30b   :  { %v798_v57 = vadd.f32 %v797_v14, %v743_v41  ;;  %v951_v14 = vld [vmem:[%s2076_s11 + $0x10] sm:$0xff] }
 0x30d   :  { %v821_v55 = vmax.f32 %v798_v57, 0.0 }
 0x312   :  { %v800_v15 = vpop.f32.mrf.mxu3 }
 0x313   :  { %v801_v50 = vadd.f32 %v800_v15, %v748_v46  ;;  %v952_v15 = vld [vmem:[%s2076_s11 + $0x18] sm:$0xff] }
 0x315   :  { %v822_v59 = vmax.f32 %v801_v50, 0.0 }
 0x31a   :  { %v803_v16 = vpop.f32.mrf.mxu3 }
 0x31b   :  { %v804_v53 = vadd.f32 %v803_v16, %v753_v51  ;;  %v975_v16 = vpop.permute.xlu2 %974 }
 0x31d   :  { %v823_v39 = vmax.f32 %v804_v53, 0.0 }
 0x322   :  { %v806_v19 = vpop.f32.mrf.mxu3 }
 0x323   :  { %v807_v42 = vadd.f32 %v806_v19, %v758_v36  ;;  %v960_v19 = vpop.permute.xlu2 %959  ;;  %v1023_v36 = vld [vmem:[%s2078_s13] sm:$0xff] }
 0x325   :  { %v824_v43 = vmax.f32 %v807_v42, 0.0 }
 0x32a   :  { %v809_v20 = vpop.f32.mrf.mxu3 }
 0x32b   :  { %v810_v40 = vadd.f32 %v809_v20, %v763_v22 }
 0x32d   :  { %v825_v33 = vmax.f32 %v810_v40, 0.0  ;;  %v1026_v40 = vld [vmem:[%s2078_s13 + $0x18] sm:$0xff] }
 0x332   :  { %v812_v23 = vpop.f32.mrf.mxu3 }
 0x333   :  { %v813_v13 = vadd.f32 %v812_v23, %v768_v30  ;;  %v970_v30 = vpop.permute.xlu0 %969 }
 0x335   :  { %v826_v47 = vmax.f32 %v813_v13, 0.0  ;;  %v1024_v13 = vld [vmem:[%s2078_s13 + $0x8] sm:$0xff] }
 0x33a   :  { %v815_v29 = vpop.f32.mrf.mxu3 }
 0x33b   :  { %v816_v18 = vadd.f32 %v815_v29, %v773_v25  ;;  %v1049_v51 = vpop.permute.xlu0 %1048 }
 0x33d   :  { %v827_v8 = vmax.f32 %v816_v18, 0.0 }
 0x342   :  { %v818_v32 = vpop.f32.mrf.mxu3 }
 0x343   :  { %v819_v34 = vadd.f32 %v818_v32, %v778_v27  ;;  %v965_v27 = vpop.permute.xlu1 %964 }
 0x345   :  { %v828_v37 = vmax.f32 %v819_v34, 0.0 }
 0x347   :  { %878 = vmatpush.msra.mxu3 %v828_v37  ;;  %v1025_v37 = vld [vmem:[%s2078_s13 + $0x10] sm:$0xff] }
 0x349   :  { %879 = vmatpush.msra.mxu3 %v827_v8 }
 0x34b   :  { %880 = vmatpush.msra.mxu3 %v826_v47  ;;  %v1044_v53 = vpop.permute.xlu1 %1043 }
 0x34d   :  { %881 = vmatpush.msra.mxu3 %v825_v33 }
 0x34f   :  { %882 = vmatpush.msra.mxu3 %v824_v43  ;;  %v1039_v43 = vpop.permute.xlu2 %1038 }
 0x351   :  { %883 = vmatpush.msra.mxu3 %v823_v39  ;;  %v1034_v39 = vpop.permute.xlu0 %1033 }
 0x353   :  { %884 = vmatpush.msra.mxu3 %v822_v59 }
 0x355   :  { %885 = vmatpush.msra.mxu3 %v821_v55 }
 0x356   :  { %1174 = vmatmul.msk.f32.vlgmr.msra.gmra.mxu3 %vm857_vm0, %v829_v38 }
 0x35e   :  { %1175 = vmatmul.msk.f32.gmra.mxu3 %vm857_vm0, %v830_v60 }
 0x366   :  { %1176 = vmatmul.msk.f32.gmra.mxu3 %vm857_vm0, %v831_v56  ;;  %v1096_v56 = vld [vmem:[%s2079_s15] sm:$0xff] }
 0x36e   :  { %1177 = vmatmul.msk.f32.gmra.mxu3 %vm857_vm0, %v832_v31  ;;  %v1097_v31 = vld [vmem:[%s2079_s15 + $0x8] sm:$0xff] }
 0x3d9   :  { %v887_v61 = vpop.f32.mrf.mxu3 }
 0x3da   :  { %v888_v17 = vadd.f32 %v887_v61, %v840_v49 }
 0x3dc   :  { %v899_v4 = vmax.f32 %v888_v17, 0.0 }
 0x3e1   :  { %v890_v28 = vpop.f32.mrf.mxu3 }
 0x3e2   :  { %v891_v21 = vadd.f32 %v890_v28, %v845_v58  ;;  %v1103_v28 = vpop.permute.xlu1 %1102 }
 0x3e4   :  { %v900_v12 = vmax.f32 %v891_v21, 0.0  ;;  %v1146_v21 = vpop.permute.xlu0 %1145 }
 0x3e9   :  { %v893_v45 = vpop.f32.mrf.mxu3 }
 0x3ea   :  { %v894_v35 = vadd.f32 %v893_v45, %v850_v24  ;;  %v1151_v58 = vpop.permute.xlu1 %1150 }
 0x3ec   :  { %v901_v5 = vmax.f32 %v894_v35, 0.0 }
 0x3f1   :  { %v896_v54 = vpop.f32.mrf.mxu3 }
 0x3f2   :  { %v897_v1 = vadd.f32 %v896_v54, %v855_v0  ;;  %v1108_v0 = vpop.permute.xlu2 %1107 }
 0x3f4   :  { %v902_v3 = vmax.f32 %v897_v1, 0.0 }
 0x3f6   :  { %936 = vmatpush.msrb.mxu3 %v902_v3 }
 0x3f8   :  { %937 = vmatpush.msrb.mxu3 %v901_v5 }
 0x3fa   :  { %938 = vmatpush.msrb.mxu3 %v900_v12 }
 0x3fc   :  { %939 = vmatpush.msrb.mxu3 %v899_v4 }
 0x3fd   :  { %1178 = vmatmul.msk.f32.vlgmr.msrb.gmra.mxu3 %vm917_vm1, %v903_v7 }
 0x405   :  { %1179 = vmatmul.msk.f32.gmra.mxu3 %vm917_vm1, %v904_v10 }
 0x480   :  { %v941_v63 = vpop.f32.mrf.mxu3 }
 0x481   :  { %v942_v44 = vadd.f32 %v941_v63, %v910_v62  ;;  %v1163_v63 = vstv %s2080_s18 }
 0x483   :  { %v947_v6 = vmax.f32 %v942_v44, 0.0 }
 0x488   :  { %v944_v48 = vpop.f32.mrf.mxu3 }
 0x489   :  { %v945_v26 = vadd.f32 %v944_v48, %v915_v52 }
 0x48b   :  { %v948_v2 = vmax.f32 %v945_v26, 0.0 }
 0x48d   :  { %1004 = vmatpush.msra.mxu3 %v948_v2 }
 0x48f   :  { %1005 = vmatpush.msra.mxu3 %v947_v6 }
 0x490   :  { %1180 = vmatmul.msk.f32.vlgmr.msra.gmra.mxu3 %vm977_vm2, %v949_v9 }
 0x498   :  { %1181 = vmatmul.msk.f32.gmra.mxu3 %vm977_vm2, %v950_v11 }
 0x4a0   :  { %1182 = vmatmul.msk.f32.gmra.mxu3 %vm977_vm2, %v951_v14 }
 0x4a8   :  { %1183 = vmatmul.msk.f32.gmra.mxu3 %vm977_vm2, %v952_v15 }
 0x513   :  { %v1007_v20 = vpop.f32.mrf.mxu3 }
 0x514   :  { %v1008_v23 = vadd.f32 %v1007_v20, %v960_v19 }
 0x516   :  { %1019 = vst [vmem:[%s2077_s19] sm:$0xff] %v1008_v23 }
 0x51b   :  { %v1010_v25 = vpop.f32.mrf.mxu3 }
 0x51c   :  { %v1011_v29 = vadd.f32 %v1010_v25, %v965_v27 }
 0x51e   :  { %1020 = vst [vmem:[%s2077_s19 + $0x8] sm:$0xff] %v1011_v29 }
 0x523   :  { %v1013_v22 = vpop.f32.mrf.mxu3 }
 0x524   :  { %v1014_v32 = vadd.f32 %v1013_v22, %v970_v30 }
 0x526   :  { %1021 = vst [vmem:[%s2077_s19 + $0x10] sm:$0xff] %v1014_v32 }
 0x52b   :  { %v1016_v18 = vpop.f32.mrf.mxu3 }
 0x52c   :  { %v1017_v34 = vadd.f32 %v1016_v18, %v975_v16 }
 0x52e   :  { %1022 = vst [vmem:[%s2077_s19 + $0x18] sm:$0xff] %v1017_v34  ;;  %1075 = vmatpush.msra.mxu1 %v1017_v34 }
 0x530   :  { %1076 = vmatpush.msra.mxu1 %v1014_v32 }
 0x532   :  { %1077 = vmatpush.msra.mxu1 %v1011_v29 }
 0x534   :  { %1078 = vmatpush.msra.mxu1 %v1008_v23 }
 0x535   :  { %1184 = vmatmul.msk.f32.vlgmr.msra.gmra.mxu1 %vm917_vm1, %v1023_v36 }
 0x53d   :  { %1185 = vmatmul.msk.f32.gmra.mxu1 %vm917_vm1, %v1024_v13 }
 0x545   :  { %1186 = vmatmul.msk.f32.gmra.mxu1 %vm917_vm1, %v1025_v37 }
 0x54d   :  { %1187 = vmatmul.msk.f32.gmra.mxu1 %vm917_vm1, %v1026_v40 }
 0x5b2   :  { %v1080_v8 = vpop.f32.mrf.mxu1 }
 0x5b3   :  { %v1081_v59 = vadd.f32 %v1080_v8, %v1034_v39 }
 0x5b5   :  { %v1092_v60 = vmax.f32 %v1081_v59, 0.0 }
 0x5ba   :  { %v1083_v42 = vpop.f32.mrf.mxu1 }
 0x5bb   :  { %v1084_v41 = vadd.f32 %v1083_v42, %v1039_v43 }
 0x5bd   :  { %v1093_v38 = vmax.f32 %v1084_v41, 0.0 }
 0x5c2   :  { %v1086_v47 = vpop.f32.mrf.mxu1 }
 0x5c3   :  { %v1087_v46 = vadd.f32 %v1086_v47, %v1044_v53 }
 0x5c5   :  { %v1094_v55 = vmax.f32 %v1087_v46, 0.0 }
 0x5ca   :  { %v1089_v33 = vpop.f32.mrf.mxu1 }
 0x5cb   :  { %v1090_v50 = vadd.f32 %v1089_v33, %v1049_v51 }
 0x5cd   :  { %v1095_v57 = vmax.f32 %v1090_v50, 0.0 }
 0x5cf   :  { %1128 = vmatpush.msra.mxu2 %v1095_v57 }
 0x5d1   :  { %1129 = vmatpush.msra.mxu2 %v1094_v55 }
 0x5d3   :  { %1130 = vmatpush.msra.mxu2 %v1093_v38 }
 0x5d5   :  { %1131 = vmatpush.msra.mxu2 %v1092_v60 }
 0x5d6   :  { %1188 = vmatmul.msk.f32.vlgmr.msra.gmra.mxu2 %vm917_vm1, %v1096_v56 }
 0x5de   :  { %1189 = vmatmul.msk.f32.gmra.mxu2 %vm917_vm1, %v1097_v31 }
 0x659   :  { %v1133_v61 = vpop.f32.mrf.mxu2 }
 0x65a   :  { %v1134_v45 = vadd.f32 %v1133_v61, %v1103_v28 }
 0x65c   :  { %v1139_v54 = vmax.f32 %v1134_v45, 0.0 }
 0x65e   :  { %v1153_v3 = vmul.f32 %v1146_v21, %v1139_v54 }
 0x661   :  { %v1136_v24 = vpop.f32.mrf.mxu2 }
 0x662   :  { %v1137_v35 = vadd.f32 %v1136_v24, %v1108_v0 }
 0x664   :  { %v1140_v1 = vmax.f32 %v1137_v35, 0.0 }
 0x666   :  { %v1154_v49 = vmul.f32 %v1151_v58, %v1140_v1 }
 0x668   :  { %v1155_v17 = vadd.f32 %v1154_v49, %v1153_v3 }
 0x66a   :  { %v1156_v5 = vrot.slane %v1155_v17, 4 }
 0x66c   :  { %v1157_v12 = vadd.f32 %v1156_v5, %v1155_v17 }
 0x66e   :  { %v1158_v4 = vrot.slane %v1157_v12, 2 }
 0x670   :  { %v1159_v7 = vadd.f32 %v1158_v4, %v1157_v12 }
 0x672   :  { %v1160_v10 = vrot.slane %v1159_v7, 1 }
 0x674   :  { %v1161_v62 = vadd.f32 %v1160_v10, %v1159_v7 }
 0x676   :  { %v1164_v52 = vadd.f32 %v1163_v63, %v1161_v62 }
 0x678   :  { %1165 = vst [vmem:[%s2081_s20] sm:$0x1] %v1164_v52 }

</bundles_post_ra>
